<compile_context>
chip_gen: v7x
topology: tpu7x:2x2x1
jax: 0.10.0
libtpu: 0.0.40
codegen_flags: <defaults>
</compile_context>

<pallas_src>
import functools

import jax
import jax.numpy as jnp
from jax.experimental import pallas as pl
from jax.experimental.pallas import tpu as pltpu


# ---------------------------------------------------------------------------
# Fused kernel: (TM, Cin) @ (Cin, Cout) + bias -> [LayerNorm] -> [LeakyReLU]
# ---------------------------------------------------------------------------
def _linear_norm_act_kernel(x_ref, w_ref, b_ref, g_ref, beta_ref, o_ref, *,
                            use_ln, use_act, eps, neg_slope):
    y = jnp.dot(x_ref[...], w_ref[...], preferred_element_type=jnp.float32)
    y = y + b_ref[...]                                    # (TM, Cout) + (1, Cout)

    if use_ln:
        # LayerNorm over the feature (lane) dim; biased variance like torch.
        mean = jnp.mean(y, axis=-1, keepdims=True)
        yc = y - mean
        var = jnp.mean(yc * yc, axis=-1, keepdims=True)
        inv = jax.lax.rsqrt(var + eps)
        y = yc * inv * g_ref[...] + beta_ref[...]

    if use_act:
        # LeakyReLU(0.2): max(y, 0.2*y) since slope < 1 (one mul + one max).
        y = jnp.maximum(y, neg_slope * y)

    o_ref[...] = y.astype(o_ref.dtype)


# ---------------------------------------------------------------------------
# Wrapper
# ---------------------------------------------------------------------------
def linear_forward(x, params, *, bn=True, act=True, eps=1e-5, neg_slope=0.2,
                   tile_m=512):
    """Pallas equivalent of the PyTorch `Linear` module.

    x:      [B, N, Cin] float32
    params: dict with 'weight' [Cout, Cin], 'bias' [Cout],
            'ln_gamma'/'ln_beta' [Cout]                      (bn=True path)
            'bn_gamma'/'bn_beta'/'bn_mean'/'bn_var' [Cout]   (bn=False path, eval)
    returns [B, N, Cout] float32
    """
    B, N, Cin = x.shape
    w = params["weight"]                                  # (Cout, Cin)
    b = params["bias"]                                    # (Cout,)
    Cout = w.shape[0]

    if bn:
        w_eff = jnp.transpose(w, (1, 0))                  # (Cin, Cout)
        b_eff = b
        g = params["ln_gamma"]
        beta = params["ln_beta"]
    else:
        # TODO(synk): BatchNorm1d is folded in eval mode (running stats);
        #             training-mode batch statistics are not computed in-kernel.
        s = params["bn_gamma"] / jnp.sqrt(params["bn_var"] + eps)
        w_eff = jnp.transpose(w, (1, 0)) * s[None, :]
        b_eff = s * (b - params["bn_mean"]) + params["bn_beta"]
        g = jnp.ones((Cout,), jnp.float32)                # unused in kernel
        beta = jnp.zeros((Cout,), jnp.float32)            # unused in kernel

    # Flatten (B, N) -> rows; pad rows to a multiple of the tile.
    M = B * N
    x2 = x.reshape(M, Cin)
    tm = min(int(tile_m), M)
    pad = (-M) % tm
    if pad:
        x2 = jnp.pad(x2, ((0, pad), (0, 0)))
    Mp = M + pad

    kernel = functools.partial(
        _linear_norm_act_kernel,
        use_ln=bool(bn), use_act=bool(act),
        eps=float(eps), neg_slope=float(neg_slope))

    grid_m = Mp // tm
    out = pl.pallas_call(
        kernel,
        out_shape=jax.ShapeDtypeStruct((Mp, Cout), jnp.float32),
        grid_spec=pltpu.PrefetchScalarGridSpec(
            num_scalar_prefetch=0,
            grid=(grid_m,),
            in_specs=[
                pl.BlockSpec((tm, Cin), lambda i: (i, 0)),      # row tile of x
                pl.BlockSpec((Cin, Cout), lambda i: (0, 0)),    # resident weight
                pl.BlockSpec((1, Cout), lambda i: (0, 0)),      # bias
                pl.BlockSpec((1, Cout), lambda i: (0, 0)),      # LN gamma
                pl.BlockSpec((1, Cout), lambda i: (0, 0)),      # LN beta
            ],
            out_specs=pl.BlockSpec((tm, Cout), lambda i: (i, 0)),
        ),
        compiler_params=pltpu.CompilerParams(
            dimension_semantics=("parallel",)),               # row tiles independent
    )(x2, w_eff, b_eff.reshape(1, Cout), g.reshape(1, Cout), beta.reshape(1, Cout))

    return out[:M].reshape(B, N, Cout)


# ---------------------------------------------------------------------------
# Pure-JAX reference (for correctness check)
# ---------------------------------------------------------------------------
def linear_forward_ref(x, params, *, bn=True, act=True, eps=1e-5, neg_slope=0.2):
    y = jnp.einsum("bnc,oc->bno", x, params["weight"],
                   precision=jax.lax.Precision.HIGHEST) + params["bias"]
    if bn:
        mean = jnp.mean(y, axis=-1, keepdims=True)
        var = jnp.mean((y - mean) ** 2, axis=-1, keepdims=True)
        y = (y - mean) / jnp.sqrt(var + eps) * params["ln_gamma"] + params["ln_beta"]
    else:
        s = params["bn_gamma"] / jnp.sqrt(params["bn_var"] + eps)
        y = (y - params["bn_mean"]) * s + params["bn_beta"]
    if act:
        y = jnp.where(y >= 0.0, y, neg_slope * y)
    return y


if __name__ == "__main__":
    key = jax.random.PRNGKey(0)
    kx, kw, kb, kg, kbt, k1, k2, k3, k4 = jax.random.split(key, 9)

    # Small shapes consistent with the module; feature dims kept lane-friendly.
    B, N, Cin, Cout = 2, 256, 64, 128

    x = jax.random.normal(kx, (B, N, Cin), jnp.float32)
    params = {
        "weight": 0.1 * jax.random.normal(kw, (Cout, Cin), jnp.float32),
        "bias": 0.1 * jax.random.normal(kb, (Cout,), jnp.float32),
        "ln_gamma": jax.random.uniform(kg, (Cout,), jnp.float32, 0.5, 1.5),
        "ln_beta": 0.1 * jax.random.normal(kbt, (Cout,), jnp.float32),
        "bn_gamma": jax.random.uniform(k1, (Cout,), jnp.float32, 0.5, 1.5),
        "bn_beta": 0.1 * jax.random.normal(k2, (Cout,), jnp.float32),
        "bn_mean": 0.1 * jax.random.normal(k3, (Cout,), jnp.float32),
        "bn_var": jax.random.uniform(k4, (Cout,), jnp.float32, 0.5, 1.5),
    }

    # Default module configuration: bn=True (LayerNorm), act=True (LeakyReLU).
    out_ln = jax.block_until_ready(linear_forward(x, params, bn=True, act=True))
    # Alternate path: bn=False (BatchNorm1d, eval mode folded) + LeakyReLU.
    out_bn = jax.block_until_ready(linear_forward(x, params, bn=False, act=True))

    ref_ln = linear_forward_ref(x, params, bn=True, act=True)
    ref_bn = linear_forward_ref(x, params, bn=False, act=True)

    assert out_ln.shape == (B, N, Cout), out_ln.shape
    assert out_bn.shape == (B, N, Cout), out_bn.shape
    assert bool(jnp.all(jnp.isfinite(out_ln)))
    assert bool(jnp.all(jnp.isfinite(out_bn)))
    assert bool(jnp.allclose(out_ln, ref_ln, atol=1e-2, rtol=1e-2)), \
        float(jnp.max(jnp.abs(out_ln - ref_ln)))
    assert bool(jnp.allclose(out_bn, ref_bn, atol=1e-2, rtol=1e-2)), \
        float(jnp.max(jnp.abs(out_bn - ref_bn)))
    print("KERNEL_OK")
</pallas_src>

<mosaic_0001>
module attributes {stable_mosaic.version = 11 : i64} {
  func.func @_linear_norm_act_kernel(%arg0: i32, %arg1: memref<512x64xf32, #tpu.memory_space<vmem>>, %arg2: memref<64x128xf32, #tpu.memory_space<vmem>>, %arg3: memref<1x128xf32, #tpu.memory_space<vmem>>, %arg4: memref<1x128xf32, #tpu.memory_space<vmem>>, %arg5: memref<1x128xf32, #tpu.memory_space<vmem>>, %arg6: memref<512x128xf32, #tpu.memory_space<vmem>>) attributes {dimension_semantics = [#tpu.dimension_semantics<parallel>], iteration_bounds = array<i64: 1>, scalar_prefetch = 0 : i64, scratch_operands = 0 : i64, tpu.core_type = #tpu.core_type<tc>, window_params = [{transform_indices = @transform_0, window_bounds = array<i64: 512, 64>}, {pipeline_mode = #tpu.pipeline_mode<synchronous>, transform_indices = @transform_1, window_bounds = array<i64: 64, 128>}, {pipeline_mode = #tpu.pipeline_mode<synchronous>, transform_indices = @transform_2, window_bounds = array<i64: 1, 128>}, {pipeline_mode = #tpu.pipeline_mode<synchronous>, transform_indices = @transform_3, window_bounds = array<i64: 1, 128>}, {pipeline_mode = #tpu.pipeline_mode<synchronous>, transform_indices = @transform_4, window_bounds = array<i64: 1, 128>}, {transform_indices = @transform_5, window_bounds = array<i64: 512, 128>}]} {
    %c0 = arith.constant 0 : index
    %c0_0 = arith.constant 0 : index
    %0 = vector.load %arg1[%c0, %c0_0] : memref<512x64xf32, #tpu.memory_space<vmem>>, vector<512x64xf32>
    %c0_1 = arith.constant 0 : index
    %c0_2 = arith.constant 0 : index
    %1 = vector.load %arg2[%c0_1, %c0_2] : memref<64x128xf32, #tpu.memory_space<vmem>>, vector<64x128xf32>
    %cst = arith.constant dense<0.000000e+00> : vector<512x128xf32>
    %2 = tpu.matmul %0, %1, %cst {dimension_numbers = #tpu.dot_dimension_numbers<[1], [0], [0], [1], [0, 0, 1, 1], [], []>} : vector<512x64xf32>, vector<64x128xf32>, vector<512x128xf32> -> vector<512x128xf32>
    %c0_3 = arith.constant 0 : index
    %c0_4 = arith.constant 0 : index
    %3 = vector.load %arg3[%c0_3, %c0_4] : memref<1x128xf32, #tpu.memory_space<vmem>>, vector<1x128xf32>
    %4 = vector.broadcast %3 : vector<1x128xf32> to vector<512x128xf32>
    %5 = arith.addf %2, %4 : vector<512x128xf32>
    %cst_5 = arith.constant dense<0.000000e+00> : vector<512xf32>
    %6 = vector.multi_reduction <add>, %5, %cst_5 [1] : vector<512x128xf32> to vector<512xf32>
    %7 = vector.shape_cast %6 : vector<512xf32> to vector<512x1xf32>
    %cst_6 = arith.constant 1.280000e+02 : f32
    %8 = vector.broadcast %cst_6 : f32 to vector<512x1xf32>
    %9 = arith.divf %7, %8 : vector<512x1xf32>
    %10 = vector.broadcast %9 : vector<512x1xf32> to vector<512x128xf32>
    %11 = arith.subf %5, %10 : vector<512x128xf32>
    %12 = arith.mulf %11, %11 : vector<512x128xf32>
    %cst_7 = arith.constant dense<0.000000e+00> : vector<512xf32>
    %13 = vector.multi_reduction <add>, %12, %cst_7 [1] : vector<512x128xf32> to vector<512xf32>
    %14 = vector.shape_cast %13 : vector<512xf32> to vector<512x1xf32>
    %cst_8 = arith.constant 1.280000e+02 : f32
    %15 = vector.broadcast %cst_8 : f32 to vector<512x1xf32>
    %16 = arith.divf %14, %15 : vector<512x1xf32>
    %cst_9 = arith.constant 9.99999974E-6 : f32
    %17 = vector.broadcast %cst_9 : f32 to vector<512x1xf32>
    %18 = arith.addf %16, %17 : vector<512x1xf32>
    %19 = math.rsqrt %18 : vector<512x1xf32>
    %20 = vector.broadcast %19 : vector<512x1xf32> to vector<512x128xf32>
    %21 = arith.mulf %11, %20 : vector<512x128xf32>
    %c0_10 = arith.constant 0 : index
    %c0_11 = arith.constant 0 : index
    %22 = vector.load %arg4[%c0_10, %c0_11] : memref<1x128xf32, #tpu.memory_space<vmem>>, vector<1x128xf32>
    %23 = vector.broadcast %22 : vector<1x128xf32> to vector<512x128xf32>
    %24 = arith.mulf %21, %23 : vector<512x128xf32>
    %c0_12 = arith.constant 0 : index
    %c0_13 = arith.constant 0 : index
    %25 = vector.load %arg5[%c0_12, %c0_13] : memref<1x128xf32, #tpu.memory_space<vmem>>, vector<1x128xf32>
    %26 = vector.broadcast %25 : vector<1x128xf32> to vector<512x128xf32>
    %27 = arith.addf %24, %26 : vector<512x128xf32>
    %cst_14 = arith.constant 2.000000e-01 : f32
    %28 = vector.broadcast %cst_14 : f32 to vector<512x128xf32>
    %29 = arith.mulf %28, %27 : vector<512x128xf32>
    %30 = arith.maximumf %27, %29 : vector<512x128xf32>
    %c0_15 = arith.constant 0 : index
    %c0_16 = arith.constant 0 : index
    %31 = vector.load %arg6[%c0_15, %c0_16] : memref<512x128xf32, #tpu.memory_space<vmem>>, vector<512x128xf32>
    tpu.vector_store %arg6[%c0_15, %c0_16], %30 {strides = array<i32>} : memref<512x128xf32, #tpu.memory_space<vmem>>, vector<512x128xf32>,
    return
  }
  func.func @transform_0(%arg0: i32) -> (i32, i32) {
    %c0_i32 = arith.constant 0 : i32
    %c0_i32_0 = arith.constant 0 : i32
    return %arg0, %c0_i32 : i32, i32
  }
  func.func @transform_1(%arg0: i32) -> (i32, i32) {
    %c0_i32 = arith.constant 0 : i32
    %c0_i32_0 = arith.constant 0 : i32
    %c0_i32_1 = arith.constant 0 : i32
    return %c0_i32, %c0_i32_0 : i32, i32
  }
  func.func @transform_2(%arg0: i32) -> (i32, i32) {
    %c0_i32 = arith.constant 0 : i32
    %c0_i32_0 = arith.constant 0 : i32
    %c0_i32_1 = arith.constant 0 : i32
    return %c0_i32, %c0_i32_0 : i32, i32
  }
  func.func @transform_3(%arg0: i32) -> (i32, i32) {
    %c0_i32 = arith.constant 0 : i32
    %c0_i32_0 = arith.constant 0 : i32
    %c0_i32_1 = arith.constant 0 : i32
    return %c0_i32, %c0_i32_0 : i32, i32
  }
  func.func @transform_4(%arg0: i32) -> (i32, i32) {
    %c0_i32 = arith.constant 0 : i32
    %c0_i32_0 = arith.constant 0 : i32
    %c0_i32_1 = arith.constant 0 : i32
    return %c0_i32, %c0_i32_0 : i32, i32
  }
  func.func @transform_5(%arg0: i32) -> (i32, i32) {
    %c0_i32 = arith.constant 0 : i32
    %c0_i32_0 = arith.constant 0 : i32
    return %arg0, %c0_i32 : i32, i32
  }
}

</mosaic_0001>

<bundles_post_ra>
// kernel: tpu_custom_call.1
= control target key start
LH: loop header
LB: loop body
LE: loop exit
PB: predicated region body
PF: predicated region fallthrough
CT: control target
= control target key end

     0   :  { %vm100_vm0 = vcmask 523264   ;;  %s3301_s0 = inlined_call_operand.vmem [shape: f32[512,64], index: 0, kind: input, shape index: {}]   ;;  %s3302_s1 = inlined_call_operand.vmem [shape: f32[64,128], index: 1, kind: input, shape index: {}]   ;;  %s3303_s2 = inlined_call_operand.vmem [shape: f32[1,128], index: 2, kind: input, shape index: {}]   ;;  %s3304_s3 = inlined_call_operand.vmem [shape: f32[1,128], index: 3, kind: input, shape index: {}]   ;;  %s3305_s4 = inlined_call_operand.vmem [shape: f32[1,128], index: 4, kind: input, shape index: {}]   ;;  %s3306_s5 = inlined_call_operand.hbm [shape: f32[512,128], index: 5, kind: output, shape index: {}]  }
   0x1   :  { %v85_v0 = vld [vmem:[%s3302_s1] sm:$0xff]  ;;  %v86_v1 = vld [vmem:[%s3302_s1 + $0x8] sm:$0xff]  ;;  %v87_v2 = vld [vmem:[%s3302_s1 + $0x10] sm:$0xff] }
   0x2   :  { %v1984_v3 = vpack.c.bf16 %v86_v1, %v85_v0  ;;  %v88_v4 = vld [vmem:[%s3302_s1 + $0x18] sm:$0xff]  ;;  %v89_v6 = vld [vmem:[%s3302_s1 + $0x20] sm:$0xff]  ;;  %v90_v7 = vld [vmem:[%s3302_s1 + $0x28] sm:$0xff] }
   0x3   :  { %v1988_v5 = vpack.c.bf16 %v88_v4, %v87_v2  ;;  %v21_v8 = vld [vmem:[%s3301_s0] sm:$0xff]  ;;  %v1992_v10 = vpack.c.bf16 %v90_v7, %v89_v6  ;;  %v91_v11 = vld [vmem:[%s3302_s1 + $0x30] sm:$0xff]  ;;  %v92_v12 = vld [vmem:[%s3302_s1 + $0x38] sm:$0xff] }
   0x4   :  { %1985 = vmatprep.subr.bf16.mxu0 %v1984_v3  ;;  %2000 = vmatprep.subr.bf16.mxu1 %v1984_v3  ;;  %v53_v9 = vld [vmem:[%s3301_s0 + $0x100] sm:$0xff]  ;;  %v1996_v13 = vpack.c.bf16 %v92_v12, %v91_v11  ;;  %v22_v14 = vld [vmem:[%s3301_s0 + $0x8] sm:$0xff]  ;;  %v23_v16 = vld [vmem:[%s3301_s0 + $0x10] sm:$0xff] }
   0x5   :  { %1987 = vmatpush3.bf16.msra.mxu0 %v1984_v3  ;;  %2004 = vmatpush3.bf16.msra.mxu1 %v1984_v3  ;;  %v54_v15 = vld [vmem:[%s3301_s0 + $0x108] sm:$0xff]  ;;  %v55_v17 = vld [vmem:[%s3301_s0 + $0x110] sm:$0xff]  ;;  %v24_v18 = vld [vmem:[%s3301_s0 + $0x18] sm:$0xff] }
   0x6   :  { %1989 = vmatprep.subr.bf16.mxu0 %v1988_v5  ;;  %2001 = vmatprep.subr.bf16.mxu1 %v1988_v5  ;;  %v56_v19 = vld [vmem:[%s3301_s0 + $0x118] sm:$0xff]  ;;  %v25_v20 = vld [vmem:[%s3301_s0 + $0x20] sm:$0xff]  ;;  %v26_v22 = vld [vmem:[%s3301_s0 + $0x28] sm:$0xff] }
   0x7   :  { %1888 = vmatprep.mubr.msk.f32.mxu0 %vm100_vm0, %v21_v8  ;;  %1936 = vmatprep.mubr.msk.f32.mxu1 %vm100_vm0, %v53_v9  ;;  %v57_v21 = vld [vmem:[%s3301_s0 + $0x120] sm:$0xff]  ;;  %v58_v23 = vld [vmem:[%s3301_s0 + $0x128] sm:$0xff] }
   0x9   :  { %1991 = vmatpush3.bf16.msra.mxu0 %v1988_v5  ;;  %2005 = vmatpush3.bf16.msra.mxu1 %v1988_v5 }
   0xa   :  { %1993 = vmatprep.subr.bf16.mxu0 %v1992_v10  ;;  %2002 = vmatprep.subr.bf16.mxu1 %v1992_v10 }
   0xd   :  { %1995 = vmatpush3.bf16.msra.mxu0 %v1992_v10  ;;  %2006 = vmatpush3.bf16.msra.mxu1 %v1992_v10 }
   0xe   :  { %1997 = vmatprep.subr.bf16.mxu0 %v1996_v13  ;;  %2003 = vmatprep.subr.bf16.mxu1 %v1996_v13 }
  0x11   :  { %1999 = vmatpush3.bf16.msra.mxu0 %v1996_v13  ;;  %2007 = vmatpush3.bf16.msra.mxu1 %v1996_v13 }
  0x14   :  { %1889 = vmatmul.mubr.msk.f32.vlgmr.msra.gmra.mrb[0].mxu0 %vm100_vm0, %v22_v14  ;;  %1937 = vmatmul.mubr.msk.f32.vlgmr.msra.gmra.mrb[0].mxu1 %vm100_vm0, %v54_v15 }
  0x15   :  { %1891 = vmatprep.mubr.msk.f32.mxu0 %vm100_vm0, %v23_v16  ;;  %1939 = vmatprep.mubr.msk.f32.mxu1 %vm100_vm0, %v55_v17 }
  0x18   :  { %1892 = vmatmul.mubr.msk.f32.gmra.mrb[2].mxu0 %vm100_vm0, %v24_v18  ;;  %1940 = vmatmul.mubr.msk.f32.gmra.mrb[2].mxu1 %vm100_vm0, %v56_v19 }
  0x19   :  { %1894 = vmatprep.mubr.msk.f32.mxu0 %vm100_vm0, %v25_v20  ;;  %1942 = vmatprep.mubr.msk.f32.mxu1 %vm100_vm0, %v57_v21 }
  0x1a   :  { %10 = vsyncpa [#allocation3], 0  ;;  %v27_v24 = vld [vmem:[%s3301_s0 + $0x30] sm:$0xff]  ;;  %v28_v26 = vld [vmem:[%s3301_s0 + $0x38] sm:$0xff] }
  0x1b   :  { %v59_v25 = vld [vmem:[%s3301_s0 + $0x130] sm:$0xff]  ;;  %v60_v27 = vld [vmem:[%s3301_s0 + $0x138] sm:$0xff]  ;;  %v29_v28 = vld [vmem:[%s3301_s0 + $0x40] sm:$0xff] }
  0x1c   :  { %1895 = vmatmul.mubr.msk.f32.gmra.mrb[4].mxu0 %vm100_vm0, %v26_v22  ;;  %1943 = vmatmul.mubr.msk.f32.gmra.mrb[4].mxu1 %vm100_vm0, %v58_v23  ;;  %v61_v29 = vld [vmem:[%s3301_s0 + $0x140] sm:$0xff]  ;;  %v30_v30 = vld [vmem:[%s3301_s0 + $0x48] sm:$0xff]  ;;  %v31_v32 = vld [vmem:[%s3301_s0 + $0x50] sm:$0xff] }
  0x1d   :  { %1897 = vmatprep.mubr.msk.f32.mxu0 %vm100_vm0, %v27_v24  ;;  %1945 = vmatprep.mubr.msk.f32.mxu1 %vm100_vm0, %v59_v25  ;;  %v62_v31 = vld [vmem:[%s3301_s0 + $0x148] sm:$0xff]  ;;  %v63_v33 = vld [vmem:[%s3301_s0 + $0x150] sm:$0xff]  ;;  %v32_v34 = vld [vmem:[%s3301_s0 + $0x58] sm:$0xff] }
  0x1e   :  { %v64_v35 = vld [vmem:[%s3301_s0 + $0x158] sm:$0xff]  ;;  %v33_v36 = vld [vmem:[%s3301_s0 + $0x60] sm:$0xff]  ;;  %v34_v38 = vld [vmem:[%s3301_s0 + $0x68] sm:$0xff] }
  0x1f   :  { %v65_v37 = vld [vmem:[%s3301_s0 + $0x160] sm:$0xff]  ;;  %v66_v39 = vld [vmem:[%s3301_s0 + $0x168] sm:$0xff]  ;;  %v35_v40 = vld [vmem:[%s3301_s0 + $0x70] sm:$0xff] }
  0x20   :  { %1898 = vmatmul.mubr.msk.f32.gmra.mrb[6].mxu0 %vm100_vm0, %v28_v26  ;;  %1946 = vmatmul.mubr.msk.f32.gmra.mrb[6].mxu1 %vm100_vm0, %v60_v27  ;;  %v67_v41 = vld [vmem:[%s3301_s0 + $0x170] sm:$0xff]  ;;  %v36_v42 = vld [vmem:[%s3301_s0 + $0x78] sm:$0xff]  ;;  %v37_v44 = vld [vmem:[%s3301_s0 + $0x80] sm:$0xff] }
  0x21   :  { %1900 = vmatprep.mubr.msk.f32.mxu0 %vm100_vm0, %v29_v28  ;;  %1948 = vmatprep.mubr.msk.f32.mxu1 %vm100_vm0, %v61_v29  ;;  %v68_v43 = vld [vmem:[%s3301_s0 + $0x178] sm:$0xff]  ;;  %v69_v45 = vld [vmem:[%s3301_s0 + $0x180] sm:$0xff]  ;;  %v38_v46 = vld [vmem:[%s3301_s0 + $0x88] sm:$0xff] }
  0x22   :  { %v70_v47 = vld [vmem:[%s3301_s0 + $0x188] sm:$0xff]  ;;  %v39_v48 = vld [vmem:[%s3301_s0 + $0x90] sm:$0xff]  ;;  %v40_v50 = vld [vmem:[%s3301_s0 + $0x98] sm:$0xff] }
  0x23   :  { %v71_v49 = vld [vmem:[%s3301_s0 + $0x190] sm:$0xff]  ;;  %v72_v51 = vld [vmem:[%s3301_s0 + $0x198] sm:$0xff]  ;;  %v41_v52 = vld [vmem:[%s3301_s0 + $0xa0] sm:$0xff] }
  0x24   :  { %1901 = vmatmul.mubr.msk.f32.gmra.mrb[8].mxu0 %vm100_vm0, %v30_v30  ;;  %1949 = vmatmul.mubr.msk.f32.gmra.mrb[8].mxu1 %vm100_vm0, %v62_v31  ;;  %v73_v53 = vld [vmem:[%s3301_s0 + $0x1a0] sm:$0xff]  ;;  %v42_v54 = vld [vmem:[%s3301_s0 + $0xa8] sm:$0xff]  ;;  %v43_v56 = vld [vmem:[%s3301_s0 + $0xb0] sm:$0xff] }
  0x25   :  { %1903 = vmatprep.mubr.msk.f32.mxu0 %vm100_vm0, %v31_v32  ;;  %1951 = vmatprep.mubr.msk.f32.mxu1 %vm100_vm0, %v63_v33  ;;  %v74_v55 = vld [vmem:[%s3301_s0 + $0x1a8] sm:$0xff]  ;;  %v75_v57 = vld [vmem:[%s3301_s0 + $0x1b0] sm:$0xff]  ;;  %v44_v58 = vld [vmem:[%s3301_s0 + $0xb8] sm:$0xff] }
  0x26   :  { %v76_v59 = vld [vmem:[%s3301_s0 + $0x1b8] sm:$0xff]  ;;  %v45_v60 = vld [vmem:[%s3301_s0 + $0xc0] sm:$0xff]  ;;  %v46_v62 = vld [vmem:[%s3301_s0 + $0xc8] sm:$0xff] }
  0x27   :  { %v77_v61 = vld [vmem:[%s3301_s0 + $0x1c0] sm:$0xff]  ;;  %v78_v63 = vld [vmem:[%s3301_s0 + $0x1c8] sm:$0xff]  ;;  %v47_v0 = vld [vmem:[%s3301_s0 + $0xd0] sm:$0xff] }
  0x28   :  { %1904 = vmatmul.mubr.msk.f32.gmra.mrb[10].mxu0 %vm100_vm0, %v32_v34  ;;  %1952 = vmatmul.mubr.msk.f32.gmra.mrb[10].mxu1 %vm100_vm0, %v64_v35  ;;  %v79_v1 = vld [vmem:[%s3301_s0 + $0x1d0] sm:$0xff]  ;;  %v48_v2 = vld [vmem:[%s3301_s0 + $0xd8] sm:$0xff]  ;;  %v49_v4 = vld [vmem:[%s3301_s0 + $0xe0] sm:$0xff] }
  0x29   :  { %1906 = vmatprep.mubr.msk.f32.mxu0 %vm100_vm0, %v33_v36  ;;  %1954 = vmatprep.mubr.msk.f32.mxu1 %vm100_vm0, %v65_v37  ;;  %v80_v3 = vld [vmem:[%s3301_s0 + $0x1d8] sm:$0xff]  ;;  %v81_v5 = vld [vmem:[%s3301_s0 + $0x1e0] sm:$0xff]  ;;  %v50_v6 = vld [vmem:[%s3301_s0 + $0xe8] sm:$0xff] }
  0x2a   :  { %v82_v7 = vld [vmem:[%s3301_s0 + $0x1e8] sm:$0xff]  ;;  %v51_v8 = vld [vmem:[%s3301_s0 + $0xf0] sm:$0xff]  ;;  %v52_v10 = vld [vmem:[%s3301_s0 + $0xf8] sm:$0xff] }
  0x2b   :  { %v83_v9 = vld [vmem:[%s3301_s0 + $0x1f0] sm:$0xff]  ;;  %v84_v11 = vld [vmem:[%s3301_s0 + $0x1f8] sm:$0xff]  ;;  %v2481_v12 = vld [vmem:[%s3303_s2] ss:$0 sm:$0xff] }
  0x2c   :  { %1907 = vmatmul.mubr.msk.f32.gmra.mrb[12].mxu0 %vm100_vm0, %v34_v38  ;;  %1955 = vmatmul.mubr.msk.f32.gmra.mrb[12].mxu1 %vm100_vm0, %v66_v39 }
  0x2d   :  { %1909 = vmatprep.mubr.msk.f32.mxu0 %vm100_vm0, %v35_v40  ;;  %1957 = vmatprep.mubr.msk.f32.mxu1 %vm100_vm0, %v67_v41 }
  0x30   :  { %1910 = vmatmul.mubr.msk.f32.gmra.mrb[14].mxu0 %vm100_vm0, %v36_v42  ;;  %1958 = vmatmul.mubr.msk.f32.gmra.mrb[14].mxu1 %vm100_vm0, %v68_v43 }
  0x31   :  { %1912 = vmatprep.mubr.msk.f32.mxu0 %vm100_vm0, %v37_v44  ;;  %1960 = vmatprep.mubr.msk.f32.mxu1 %vm100_vm0, %v69_v45 }
  0x34   :  { %1913 = vmatmul.mubr.msk.f32.gmra.mrb[16].mxu0 %vm100_vm0, %v38_v46  ;;  %1961 = vmatmul.mubr.msk.f32.gmra.mrb[16].mxu1 %vm100_vm0, %v70_v47 }
  0x35   :  { %1915 = vmatprep.mubr.msk.f32.mxu0 %vm100_vm0, %v39_v48  ;;  %1963 = vmatprep.mubr.msk.f32.mxu1 %vm100_vm0, %v71_v49 }
  0x38   :  { %1916 = vmatmul.mubr.msk.f32.gmra.mrb[18].mxu0 %vm100_vm0, %v40_v50  ;;  %1964 = vmatmul.mubr.msk.f32.gmra.mrb[18].mxu1 %vm100_vm0, %v72_v51 }
  0x39   :  { %1918 = vmatprep.mubr.msk.f32.mxu0 %vm100_vm0, %v41_v52  ;;  %1966 = vmatprep.mubr.msk.f32.mxu1 %vm100_vm0, %v73_v53 }
  0x3c   :  { %1919 = vmatmul.mubr.msk.f32.gmra.mrb[20].mxu0 %vm100_vm0, %v42_v54  ;;  %1967 = vmatmul.mubr.msk.f32.gmra.mrb[20].mxu1 %vm100_vm0, %v74_v55 }
  0x3d   :  { %1921 = vmatprep.mubr.msk.f32.mxu0 %vm100_vm0, %v43_v56  ;;  %1969 = vmatprep.mubr.msk.f32.mxu1 %vm100_vm0, %v75_v57 }
  0x40   :  { %1922 = vmatmul.mubr.msk.f32.gmra.mrb[22].mxu0 %vm100_vm0, %v44_v58  ;;  %1970 = vmatmul.mubr.msk.f32.gmra.mrb[22].mxu1 %vm100_vm0, %v76_v59 }
  0x41   :  { %1924 = vmatprep.mubr.msk.f32.mxu0 %vm100_vm0, %v45_v60  ;;  %1972 = vmatprep.mubr.msk.f32.mxu1 %vm100_vm0, %v77_v61 }
  0x44   :  { %1925 = vmatmul.mubr.msk.f32.gmra.mrb[24].mxu0 %vm100_vm0, %v46_v62  ;;  %1973 = vmatmul.mubr.msk.f32.gmra.mrb[24].mxu1 %vm100_vm0, %v78_v63 }
  0x45   :  { %1927 = vmatprep.mubr.msk.f32.mxu0 %vm100_vm0, %v47_v0  ;;  %1975 = vmatprep.mubr.msk.f32.mxu1 %vm100_vm0, %v79_v1 }
  0x48   :  { %1928 = vmatmul.mubr.msk.f32.gmra.mrb[26].mxu0 %vm100_vm0, %v48_v2  ;;  %1976 = vmatmul.mubr.msk.f32.gmra.mrb[26].mxu1 %vm100_vm0, %v80_v3 }
  0x49   :  { %1930 = vmatprep.mubr.msk.f32.mxu0 %vm100_vm0, %v49_v4  ;;  %1978 = vmatprep.mubr.msk.f32.mxu1 %vm100_vm0, %v81_v5 }
  0x4c   :  { %1931 = vmatmul.mubr.msk.f32.gmra.mrb[28].mxu0 %vm100_vm0, %v50_v6  ;;  %1979 = vmatmul.mubr.msk.f32.gmra.mrb[28].mxu1 %vm100_vm0, %v82_v7 }
  0x4d   :  { %1933 = vmatprep.mubr.msk.f32.mxu0 %vm100_vm0, %v51_v8  ;;  %1981 = vmatprep.mubr.msk.f32.mxu1 %vm100_vm0, %v83_v9 }
  0x50   :  { %1934 = vmatmul.mubr.msk.f32.gmra.mrb[30].mxu0 %vm100_vm0, %v52_v10  ;;  %1982 = vmatmul.mubr.msk.f32.gmra.mrb[30].mxu1 %vm100_vm0, %v84_v11 }
  0xe7   :  { %v1890_v13 = vpop.f32.mrb[0].mxu0  ;;  %v1938_v14 = vpop.f32.mrb[0].mxu1 }
  0xe8   :  { %v2484_v15 = vadd.f32 %v1890_v13, %v2481_v12  ;;  %v2487_v16 = vadd.f32 %v1938_v14, %v2481_v12  ;;  %v359_v17 = vpop.f32.mrb[1].mxu0  ;;  %v519_v18 = vpop.f32.mrb[1].mxu1 }
  0xe9   :  { %v2492_v21 = vadd.f32 %v2481_v12, %v359_v17  ;;  %v2503_v28 = vadd.f32 %v2481_v12, %v519_v18 }
  0xea   :  { %744 = vadd.xlane.f32.xlu1 %v2487_v16  ;;  %680 = vadd.xlane.f32.xlu0 %v2484_v15 }
  0xeb   :  { %v1893_v19 = vpop.f32.mrb[2].mxu0  ;;  %v1941_v20 = vpop.f32.mrb[2].mxu1 }
  0xec   :  { %v2495_v22 = vadd.f32 %v1893_v19, %v2481_v12  ;;  %v369_v23 = vpop.f32.mrb[3].mxu0  ;;  %v529_v24 = vpop.f32.mrb[3].mxu1  ;;  %v2498_v25 = vadd.f32 %v1941_v20, %v2481_v12 }
  0xed   :  { %v2508_v33 = vadd.f32 %v2481_v12, %v369_v23  ;;  %v2511_v34 = vadd.f32 %v2481_v12, %v529_v24 }
  0xee   :  { %684 = vadd.xlane.f32.xlu1 %v2495_v22  ;;  %678 = vadd.xlane.f32.xlu0 %v2492_v21 }
  0xef   :  { %v1896_v26 = vpop.f32.mrb[4].mxu0  ;;  %v1944_v27 = vpop.f32.mrb[4].mxu1 }
  0xf0   :  { %v379_v29 = vpop.f32.mrb[5].mxu0  ;;  %v539_v30 = vpop.f32.mrb[5].mxu1  ;;  %v2514_v37 = vadd.f32 %v1896_v26, %v2481_v12  ;;  %v2522_v43 = vadd.f32 %v1944_v27, %v2481_v12 }
  0xf1   :  { %v2519_v38 = vadd.f32 %v2481_v12, %v379_v29  ;;  %v2527_v44 = vadd.f32 %v2481_v12, %v539_v30 }
  0xf2   :  { %748 = vadd.xlane.f32.xlu1 %v2498_v25  ;;  %742 = vadd.xlane.f32.xlu0 %v2503_v28 }
  0xf3   :  { %v1899_v31 = vpop.f32.mrb[6].mxu0  ;;  %v1947_v32 = vpop.f32.mrb[6].mxu1 }
  0xf4   :  { %v389_v35 = vpop.f32.mrb[7].mxu0  ;;  %v549_v36 = vpop.f32.mrb[7].mxu1  ;;  %v2530_v49 = vadd.f32 %v1899_v31, %v2481_v12  ;;  %v2542_v55 = vadd.f32 %v1947_v32, %v2481_v12 }
  0xf5   :  { %v2535_v50 = vadd.f32 %v2481_v12, %v389_v35  ;;  %v2547_v56 = vadd.f32 %v2481_v12, %v549_v36 }
  0xf6   :  { %682 = vadd.xlane.f32.xlu1 %v2508_v33  ;;  %746 = vadd.xlane.f32.xlu0 %v2511_v34 }
  0xf7   :  { %v1902_v39 = vpop.f32.mrb[8].mxu0  ;;  %v1950_v40 = vpop.f32.mrb[8].mxu1 }
  0xf8   :  { %v399_v41 = vpop.f32.mrb[9].mxu0  ;;  %v559_v42 = vpop.f32.mrb[9].mxu1  ;;  %v2558_v61 = vadd.f32 %v1902_v39, %v2481_v12  ;;  %v2578_v7 = vadd.f32 %v1950_v40, %v2481_v12 }
  0xf9   :  { %v2563_v62 = vadd.f32 %v2481_v12, %v399_v41  ;;  %v2583_v8 = vadd.f32 %v2481_v12, %v559_v42 }
  0xfa   :  { %688 = vadd.xlane.f32.xlu1 %v2514_v37  ;;  %686 = vadd.xlane.f32.xlu0 %v2519_v38 }
  0xfb   :  { %v1905_v45 = vpop.f32.mrb[10].mxu0  ;;  %v1953_v46 = vpop.f32.mrb[10].mxu1 }
  0xfc   :  { %v409_v47 = vpop.f32.mrb[11].mxu0  ;;  %v569_v48 = vpop.f32.mrb[11].mxu1  ;;  %v2598_v20 = vadd.f32 %v1905_v45, %v2481_v12  ;;  %v2618_v36 = vadd.f32 %v1953_v46, %v2481_v12 }
  0xfd   :  { %v2603_v23 = vadd.f32 %v2481_v12, %v409_v47  ;;  %v2623_v39 = vadd.f32 %v2481_v12, %v569_v48 }
  0xfe   :  { %752 = vadd.xlane.f32.xlu1 %v2522_v43  ;;  %750 = vadd.xlane.f32.xlu0 %v2527_v44 }
  0xff   :  { %v1908_v51 = vpop.f32.mrb[12].mxu0  ;;  %v2537_v52 = vpop.f32.mrb[12].mxu1  ;;  %3342 = vst [vmem:[#allocation5_spill] sm:$0xff] %v2623_v39 }
 0x100   :  { %v419_v53 = vpop.f32.mrb[13].mxu0  ;;  %v2539_v54 = vpop.f32.mrb[13].mxu1 }
 0x101   :  { %v2643_v48 = vadd.f32 %v2481_v12, %v419_v53  ;;  %v2659_v53 = vadd.f32 %v2537_v52, %v2481_v12 }
 0x102   :  { %692 = vadd.xlane.f32.xlu1 %v2530_v49  ;;  %690 = vadd.xlane.f32.xlu0 %v2535_v50 }
 0x103   :  { %v2549_v57 = vpop.f32.mrb[14].mxu0  ;;  %v2551_v58 = vpop.f32.mrb[14].mxu1  ;;  %3344 = vst [vmem:[#allocation7_spill] sm:$0xff] %v2643_v48  ;;  %3345 = vst [vmem:[#allocation8_spill] sm:$0xff] %v2659_v53 }
 0x104   :  { %v2553_v59 = vpop.f32.mrb[15].mxu0  ;;  %v2555_v60 = vpop.f32.mrb[15].mxu1 }
 0x106   :  { %756 = vadd.xlane.f32.xlu1 %v2542_v55  ;;  %754 = vadd.xlane.f32.xlu0 %v2547_v56 }
 0x107   :  { %v1914_v63 = vpop.f32.mrb[16].mxu0  ;;  %v1962_v0 = vpop.f32.mrb[16].mxu1 }
 0x108   :  { %v2566_v1 = vadd.f32 %v1914_v63, %v2481_v12  ;;  %v439_v2 = vpop.f32.mrb[17].mxu0  ;;  %v2569_v3 = vadd.f32 %v1962_v0, %v2481_v12  ;;  %v599_v4 = vpop.f32.mrb[17].mxu1 }
 0x109   :  { %v2572_v5 = vadd.f32 %v2481_v12, %v439_v2  ;;  %v2575_v6 = vadd.f32 %v2481_v12, %v599_v4  ;;  %v2638_v2 = vadd.f32 %v1908_v51, %v2481_v12 }
 0x10a   :  { %696 = vadd.xlane.f32.xlu1 %v2558_v61  ;;  %694 = vadd.xlane.f32.xlu0 %v2563_v62 }
 0x10b   :  { %v1917_v9 = vpop.f32.mrb[18].mxu0  ;;  %v1965_v10 = vpop.f32.mrb[18].mxu1  ;;  %3343 = vst [vmem:[#allocation6_spill] sm:$0xff] %v2638_v2 }
 0x10c   :  { %v2586_v11 = vadd.f32 %v1917_v9, %v2481_v12  ;;  %v449_v13 = vpop.f32.mrb[19].mxu0  ;;  %v2589_v14 = vadd.f32 %v1965_v10, %v2481_v12  ;;  %v609_v17 = vpop.f32.mrb[19].mxu1 }
 0x10d   :  { %v2592_v18 = vadd.f32 %v2481_v12, %v449_v13  ;;  %v2595_v19 = vadd.f32 %v2481_v12, %v609_v17 }
 0x10e   :  { %760 = vadd.xlane.f32.xlu1 %v2578_v7  ;;  %758 = vadd.xlane.f32.xlu0 %v2583_v8 }
 0x10f   :  { %v1920_v24 = vpop.f32.mrb[20].mxu0  ;;  %v1968_v26 = vpop.f32.mrb[20].mxu1 }
 0x110   :  { %v2606_v27 = vadd.f32 %v1920_v24, %v2481_v12  ;;  %v459_v29 = vpop.f32.mrb[21].mxu0  ;;  %v2609_v30 = vadd.f32 %v1968_v26, %v2481_v12  ;;  %v619_v31 = vpop.f32.mrb[21].mxu1 }
 0x111   :  { %v2612_v32 = vadd.f32 %v2481_v12, %v459_v29  ;;  %v2615_v35 = vadd.f32 %v2481_v12, %v619_v31  ;;  %v2665_v29 = vadd.f32 %v2481_v12, %v2539_v54  ;;  %v2681_v54 = vadd.f32 %v2549_v57, %v2481_v12 }
 0x112   :  { %700 = vadd.xlane.f32.xlu1 %v2598_v20  ;;  %698 = vadd.xlane.f32.xlu0 %v2603_v23 }
 0x113   :  { %v1923_v40 = vpop.f32.mrb[22].mxu0  ;;  %v1971_v41 = vpop.f32.mrb[22].mxu1  ;;  %3346 = vst [vmem:[#allocation9_spill] sm:$0xff] %v2665_v29  ;;  %3347 = vst [vmem:[#allocation10_spill] sm:$0xff] %v2681_v54 }
 0x114   :  { %v2626_v42 = vadd.f32 %v1923_v40, %v2481_v12  ;;  %v469_v45 = vpop.f32.mrb[23].mxu0  ;;  %v2629_v47 = vadd.f32 %v1971_v41, %v2481_v12  ;;  %v629_v63 = vpop.f32.mrb[23].mxu1 }
 0x115   :  { %v2632_v46 = vadd.f32 %v2481_v12, %v469_v45  ;;  %v2635_v0 = vadd.f32 %v2481_v12, %v629_v63 }
 0x116   :  { %764 = vadd.xlane.f32.xlu1 %v2618_v36  ;;  %762 = vadd.xlane.f32.xlu0 %v2623_v39 }
 0x117   :  { %v1926_v4 = vpop.f32.mrb[24].mxu0  ;;  %v1974_v9 = vpop.f32.mrb[24].mxu1 }
 0x118   :  { %v2646_v10 = vadd.f32 %v1926_v4, %v2481_v12  ;;  %v479_v13 = vpop.f32.mrb[25].mxu0  ;;  %v2649_v17 = vadd.f32 %v1974_v9, %v2481_v12  ;;  %v639_v24 = vpop.f32.mrb[25].mxu1 }
 0x119   :  { %v2652_v51 = vadd.f32 %v2481_v12, %v479_v13  ;;  %v2655_v26 = vadd.f32 %v2481_v12, %v639_v24  ;;  %v2687_v13 = vadd.f32 %v2481_v12, %v2553_v59  ;;  %v2703_v59 = vadd.f32 %v2551_v58, %v2481_v12 }
 0x11a   :  { %704 = vadd.xlane.f32.xlu1 %v2638_v2  ;;  %702 = vadd.xlane.f32.xlu0 %v2643_v48 }
 0x11b   :  { %v1929_v31 = vpop.f32.mrb[26].mxu0  ;;  %v1977_v40 = vpop.f32.mrb[26].mxu1 }
 0x11c   :  { %v2668_v41 = vadd.f32 %v1929_v31, %v2481_v12  ;;  %v489_v45 = vpop.f32.mrb[27].mxu0  ;;  %v2671_v63 = vadd.f32 %v1977_v40, %v2481_v12  ;;  %v649_v4 = vpop.f32.mrb[27].mxu1 }
 0x11d   :  { %v2674_v52 = vadd.f32 %v2481_v12, %v489_v45  ;;  %v2677_v9 = vadd.f32 %v2481_v12, %v649_v4 }
 0x11e   :  { %768 = vadd.xlane.f32.xlu1 %v2659_v53  ;;  %766 = vadd.xlane.f32.xlu0 %v2665_v29 }
 0x11f   :  { %v1932_v24 = vpop.f32.mrb[28].mxu0  ;;  %v1980_v31 = vpop.f32.mrb[28].mxu1 }
 0x120   :  { %v2690_v40 = vadd.f32 %v1932_v24, %v2481_v12  ;;  %v499_v45 = vpop.f32.mrb[29].mxu0  ;;  %v2693_v4 = vadd.f32 %v1980_v31, %v2481_v12  ;;  %v659_v48 = vpop.f32.mrb[29].mxu1  ;;  %v2709_v24 = vadd.f32 %v2481_v12, %v2555_v60 }
 0x121   :  { %v2696_v57 = vadd.f32 %v2481_v12, %v499_v45  ;;  %v2699_v53 = vadd.f32 %v2481_v12, %v659_v48 }
 0x122   :  { %3348 = vst [vmem:[#allocation11_spill] sm:$0xff] %v2690_v40  ;;  %3349 = vst [vmem:[#allocation12_spill] sm:$0xff] %v2693_v4  ;;  %708 = vadd.xlane.f32.xlu1 %v2681_v54  ;;  %706 = vadd.xlane.f32.xlu0 %v2687_v13 }
 0x123   :  { %3350 = vst [vmem:[#allocation13_spill] sm:$0xff] %v2696_v57  ;;  %v1935_v31 = vpop.f32.mrb[30].mxu0  ;;  %v1983_v29 = vpop.f32.mrb[30].mxu1 }
 0x124   :  { %v2712_v45 = vadd.f32 %v1935_v31, %v2481_v12  ;;  %v509_v2 = vpop.f32.mrb[31].mxu0  ;;  %v2715_v48 = vadd.f32 %v1983_v29, %v2481_v12  ;;  %v669_v39 = vpop.f32.mrb[31].mxu1 }
 0x125   :  { %v2718_v58 = vadd.f32 %v2481_v12, %v509_v2  ;;  %v2721_v54 = vadd.f32 %v2481_v12, %v669_v39 }
 0x126   :  { %3351 = vst [vmem:[#allocation14_spill] sm:$0xff] %v2712_v45  ;;  %3352 = vst [vmem:[#allocation15_spill] sm:$0xff] %v2715_v48  ;;  %772 = vadd.xlane.f32.xlu1 %v2703_v59  ;;  %770 = vadd.xlane.f32.xlu0 %v2709_v24 }
 0x127   :  { %3353 = vst [vmem:[#allocation16_spill] sm:$0xff] %v2718_v58  ;;  %3354 = vst [vmem:[#allocation17_spill] sm:$0xff] %v2721_v54 }
 0x12a   :  { %712 = vadd.xlane.f32.xlu1 %v2566_v1  ;;  %710 = vadd.xlane.f32.xlu0 %v2572_v5 }
 0x12e   :  { %776 = vadd.xlane.f32.xlu1 %v2569_v3  ;;  %774 = vadd.xlane.f32.xlu0 %v2575_v6 }
 0x132   :  { %716 = vadd.xlane.f32.xlu1 %v2586_v11  ;;  %714 = vadd.xlane.f32.xlu0 %v2592_v18 }
 0x136   :  { %780 = vadd.xlane.f32.xlu1 %v2589_v14  ;;  %778 = vadd.xlane.f32.xlu0 %v2595_v19 }
 0x13a   :  { %720 = vadd.xlane.f32.xlu1 %v2606_v27  ;;  %718 = vadd.xlane.f32.xlu0 %v2612_v32 }
 0x13e   :  { %784 = vadd.xlane.f32.xlu1 %v2609_v30  ;;  %782 = vadd.xlane.f32.xlu0 %v2615_v35 }
 0x142   :  { %724 = vadd.xlane.f32.xlu1 %v2626_v42  ;;  %722 = vadd.xlane.f32.xlu0 %v2632_v46 }
 0x146   :  { %788 = vadd.xlane.f32.xlu1 %v2629_v47  ;;  %786 = vadd.xlane.f32.xlu0 %v2635_v0 }
 0x14a   :  { %728 = vadd.xlane.f32.xlu1 %v2646_v10  ;;  %726 = vadd.xlane.f32.xlu0 %v2652_v51 }
 0x14e   :  { %792 = vadd.xlane.f32.xlu1 %v2649_v17  ;;  %790 = vadd.xlane.f32.xlu0 %v2655_v26 }
 0x152   :  { %732 = vadd.xlane.f32.xlu1 %v2668_v41  ;;  %730 = vadd.xlane.f32.xlu0 %v2674_v52 }
 0x156   :  { %796 = vadd.xlane.f32.xlu1 %v2671_v63  ;;  %794 = vadd.xlane.f32.xlu0 %v2677_v9 }
 0x15a   :  { %736 = vadd.xlane.f32.xlu1 %v2690_v40  ;;  %734 = vadd.xlane.f32.xlu0 %v2696_v57 }
 0x15e   :  { %800 = vadd.xlane.f32.xlu1 %v2693_v4  ;;  %798 = vadd.xlane.f32.xlu0 %v2699_v53 }
 0x162   :  { %740 = vadd.xlane.f32.xlu1 %v2712_v45  ;;  %738 = vadd.xlane.f32.xlu0 %v2718_v58 }
 0x166   :  { %804 = vadd.xlane.f32.xlu1 %v2715_v48  ;;  %802 = vadd.xlane.f32.xlu0 %v2721_v54 }
 0x177   :  { %v745_v12 = vpop.xlane.xlu1 %744  ;;  %v681_v60 = vpop.xlane.xlu0 %680 }
 0x178   :  { %v840_v39 = vmul.f32 0.0078125, %v745_v12  ;;  %v808_v2 = vmul.f32 0.0078125, %v681_v60 }
 0x17a   :  { %v2758_v29 = vsub.f32 %v2484_v15, %v808_v2  ;;  %v2763_v58 = vsub.f32 %v2487_v16, %v840_v39 }
 0x17b   :  { %v685_v31 = vpop.xlane.xlu1 %684  ;;  %v679_v57 = vpop.xlane.xlu0 %678 }
 0x17c   :  { %v810_v4 = vmul.f32 0.0078125, %v685_v31  ;;  %v807_v40 = vmul.f32 0.0078125, %v679_v57  ;;  %v936_v45 = vmul.f32 %v2758_v29, %v2758_v29  ;;  %v968_v57 = vmul.f32 %v2763_v58, %v2763_v58 }
 0x17e   :  { %1001 = vadd.xlane.f32.xlu1 %v936_v45  ;;  %v2766_v54 = vsub.f32 %v2492_v21, %v807_v40  ;;  %v2769_v60 = vsub.f32 %v2495_v22, %v810_v4 }
 0x17f   :  { %v749_v48 = vpop.xlane.xlu1 %748  ;;  %v743_v12 = vpop.xlane.xlu0 %742 }
 0x180   :  { %3355 = vst [vmem:[#allocation18_spill] sm:$0xff] %v2769_v60  ;;  %v842_v15 = vmul.f32 0.0078125, %v749_v48  ;;  %v839_v2 = vmul.f32 0.0078125, %v743_v12  ;;  %v935_v31 = vmul.f32 %v2766_v54, %v2766_v54  ;;  %v938_v45 = vmul.f32 %v2769_v60, %v2769_v60 }
 0x182   :  { %1065 = vadd.xlane.f32.xlu1 %v968_v57  ;;  %999 = vadd.xlane.f32.xlu0 %v935_v31  ;;  %v2776_v16 = vsub.f32 %v2503_v28, %v839_v2  ;;  %v2783_v39 = vsub.f32 %v2498_v25, %v842_v15 }
 0x183   :  { %v683_v21 = vpop.xlane.xlu1 %682  ;;  %v747_v40 = vpop.xlane.xlu0 %746 }
 0x184   :  { %v809_v22 = vmul.f32 0.0078125, %v683_v21  ;;  %v841_v4 = vmul.f32 0.0078125, %v747_v40  ;;  %v967_v48 = vmul.f32 %v2776_v16, %v2776_v16  ;;  %v970_v21 = vmul.f32 %v2783_v39, %v2783_v39 }
 0x186   :  { %1005 = vadd.xlane.f32.xlu1 %v938_v45  ;;  %1063 = vadd.xlane.f32.xlu0 %v967_v48  ;;  %v2786_v12 = vsub.f32 %v2508_v33, %v809_v22  ;;  %v2789_v57 = vsub.f32 %v2511_v34, %v841_v4 }
 0x187   :  { %v689_v28 = vpop.xlane.xlu1 %688  ;;  %v687_v2 = vpop.xlane.xlu0 %686 }
 0x188   :  { %v812_v31 = vmul.f32 0.0078125, %v689_v28  ;;  %v811_v60 = vmul.f32 0.0078125, %v687_v2  ;;  %v937_v40 = vmul.f32 %v2786_v12, %v2786_v12  ;;  %v969_v45 = vmul.f32 %v2789_v57, %v2789_v57 }
 0x18a   :  { %1069 = vadd.xlane.f32.xlu1 %v970_v21  ;;  %1003 = vadd.xlane.f32.xlu0 %v937_v40  ;;  %v2796_v25 = vsub.f32 %v2514_v37, %v812_v31  ;;  %v2803_v48 = vsub.f32 %v2519_v38, %v811_v60 }
 0x18b   :  { %v753_v33 = vpop.xlane.xlu1 %752  ;;  %v751_v15 = vpop.xlane.xlu0 %750 }
 0x18c   :  { %v844_v34 = vmul.f32 0.0078125, %v753_v33  ;;  %v843_v22 = vmul.f32 0.0078125, %v751_v15  ;;  %v940_v4 = vmul.f32 %v2796_v25, %v2796_v25  ;;  %v939_v15 = vmul.f32 %v2803_v48, %v2803_v48 }
 0x18e   :  { %1009 = vadd.xlane.f32.xlu1 %v940_v4  ;;  %1067 = vadd.xlane.f32.xlu0 %v969_v45  ;;  %v2806_v28 = vsub.f32 %v2522_v43, %v844_v34  ;;  %v2809_v31 = vsub.f32 %v2527_v44, %v843_v22 }
 0x18f   :  { %v693_v37 = vpop.xlane.xlu1 %692  ;;  %v691_v2 = vpop.xlane.xlu0 %690 }
 0x190   :  { %v814_v21 = vmul.f32 0.0078125, %v693_v37  ;;  %v813_v40 = vmul.f32 0.0078125, %v691_v2  ;;  %v972_v33 = vmul.f32 %v2806_v28, %v2806_v28  ;;  %v971_v45 = vmul.f32 %v2809_v31, %v2809_v31 }
 0x192   :  { %1073 = vadd.xlane.f32.xlu1 %v972_v33  ;;  %1007 = vadd.xlane.f32.xlu0 %v939_v15  ;;  %v2816_v38 = vsub.f32 %v2530_v49, %v814_v21  ;;  %v2823_v4 = vsub.f32 %v2535_v50, %v813_v40 }
 0x193   :  { %v757_v43 = vpop.xlane.xlu1 %756  ;;  %v755_v60 = vpop.xlane.xlu0 %754 }
 0x194   :  { %v846_v44 = vmul.f32 0.0078125, %v757_v43  ;;  %v845_v34 = vmul.f32 0.0078125, %v755_v60  ;;  %v942_v22 = vmul.f32 %v2816_v38, %v2816_v38  ;;  %v941_v60 = vmul.f32 %v2823_v4, %v2823_v4 }
 0x196   :  { %1013 = vadd.xlane.f32.xlu1 %v942_v22  ;;  %1071 = vadd.xlane.f32.xlu0 %v971_v45  ;;  %v2826_v37 = vsub.f32 %v2542_v55, %v846_v44  ;;  %v2829_v21 = vsub.f32 %v2547_v56, %v845_v34 }
 0x197   :  { %v697_v49 = vpop.xlane.xlu1 %696  ;;  %v695_v2 = vpop.xlane.xlu0 %694 }
 0x198   :  { %v816_v33 = vmul.f32 0.0078125, %v697_v49  ;;  %v815_v15 = vmul.f32 0.0078125, %v695_v2  ;;  %v974_v43 = vmul.f32 %v2826_v37, %v2826_v37  ;;  %v973_v45 = vmul.f32 %v2829_v21, %v2829_v21 }
 0x19a   :  { %1077 = vadd.xlane.f32.xlu1 %v974_v43  ;;  %1011 = vadd.xlane.f32.xlu0 %v941_v60  ;;  %v2836_v50 = vsub.f32 %v2558_v61, %v816_v33  ;;  %v2843_v22 = vsub.f32 %v2563_v62, %v815_v15 }
 0x19b   :  { %v761_v55 = vpop.xlane.xlu1 %760  ;;  %v759_v40 = vpop.xlane.xlu0 %758 }
 0x19c   :  { %v848_v56 = vmul.f32 0.0078125, %v761_v55  ;;  %v847_v44 = vmul.f32 0.0078125, %v759_v40  ;;  %v944_v34 = vmul.f32 %v2836_v50, %v2836_v50  ;;  %v943_v40 = vmul.f32 %v2843_v22, %v2843_v22 }
 0x19e   :  { %1017 = vadd.xlane.f32.xlu1 %v944_v34  ;;  %1075 = vadd.xlane.f32.xlu0 %v973_v45  ;;  %v2846_v49 = vsub.f32 %v2578_v7, %v848_v56  ;;  %v2849_v33 = vsub.f32 %v2583_v8, %v847_v44 }
 0x19f   :  { %v701_v61 = vpop.xlane.xlu1 %700  ;;  %v699_v2 = vpop.xlane.xlu0 %698 }
 0x1a0   :  { %3356 = vst [vmem:[#allocation19_spill] sm:$0xff] %v2849_v33  ;;  %v818_v43 = vmul.f32 0.0078125, %v701_v61  ;;  %v817_v60 = vmul.f32 0.0078125, %v699_v2  ;;  %v976_v55 = vmul.f32 %v2846_v49, %v2846_v49  ;;  %v975_v45 = vmul.f32 %v2849_v33, %v2849_v33 }
 0x1a2   :  { %1081 = vadd.xlane.f32.xlu1 %v976_v55  ;;  %1015 = vadd.xlane.f32.xlu0 %v943_v40  ;;  %v2856_v62 = vsub.f32 %v2598_v20, %v818_v43  ;;  %v2863_v34 = vsub.f32 %v2603_v23, %v817_v60  ;;  %v3360_v43 = vld [vmem:[#allocation5_spill] sm:$0xff]  ;;  %v3362_v23 = vld [vmem:[#allocation6_spill] sm:$0xff] }
 0x1a3   :  { %v765_v7 = vpop.xlane.xlu1 %764  ;;  %v763_v15 = vpop.xlane.xlu0 %762 }
 0x1a4   :  { %3357 = vst [vmem:[#allocation20_spill] sm:$0xff] %v2856_v62  ;;  %v850_v8 = vmul.f32 0.0078125, %v765_v7  ;;  %v849_v56 = vmul.f32 0.0078125, %v763_v15  ;;  %v946_v44 = vmul.f32 %v2856_v62, %v2856_v62  ;;  %3358 = vst [vmem:[#allocation21_spill] sm:$0xff] %v2863_v34  ;;  %v945_v15 = vmul.f32 %v2863_v34, %v2863_v34  ;;  %v3365_v34 = vld [vmem:[#allocation9_spill] sm:$0xff] }
 0x1a6   :  { %1021 = vadd.xlane.f32.xlu1 %v946_v44  ;;  %1079 = vadd.xlane.f32.xlu0 %v975_v45  ;;  %v2866_v61 = vsub.f32 %v2618_v36, %v850_v8  ;;  %v2869_v55 = vsub.f32 %v3360_v43, %v849_v56 }
 0x1a7   :  { %v705_v20 = vpop.xlane.xlu1 %704  ;;  %v703_v2 = vpop.xlane.xlu0 %702 }
 0x1a8   :  { %3359 = vst [vmem:[#allocation22_spill] sm:$0xff] %v2866_v61  ;;  %3361 = vst [vmem:[#allocation5_spill] sm:$0xff] %v2869_v55  ;;  %v820_v40 = vmul.f32 0.0078125, %v705_v20  ;;  %v819_v33 = vmul.f32 0.0078125, %v703_v2  ;;  %v978_v7 = vmul.f32 %v2866_v61, %v2866_v61  ;;  %v977_v8 = vmul.f32 %v2869_v55, %v2869_v55  ;;  %v3363_v2 = vld [vmem:[#allocation7_spill] sm:$0xff] }
 0x1aa   :  { %1085 = vadd.xlane.f32.xlu1 %v978_v7  ;;  %1019 = vadd.xlane.f32.xlu0 %v945_v15  ;;  %v2876_v60 = vsub.f32 %v3362_v23, %v820_v40  ;;  %v2883_v43 = vsub.f32 %v3363_v2, %v819_v33  ;;  %v3364_v7 = vld [vmem:[#allocation8_spill] sm:$0xff]  ;;  %v3367_v33 = vld [vmem:[#allocation10_spill] sm:$0xff] }
 0x1ab   :  { %v769_v36 = vpop.xlane.xlu1 %768  ;;  %v767_v45 = vpop.xlane.xlu0 %766 }
 0x1ac   :  { %v852_v56 = vmul.f32 0.0078125, %v769_v36  ;;  %v851_v44 = vmul.f32 0.0078125, %v767_v45  ;;  %v948_v20 = vmul.f32 %v2876_v60, %v2876_v60  ;;  %v947_v45 = vmul.f32 %v2883_v43, %v2883_v43 }
 0x1ae   :  { %1025 = vadd.xlane.f32.xlu1 %v948_v20  ;;  %1083 = vadd.xlane.f32.xlu0 %v977_v8  ;;  %v2886_v15 = vsub.f32 %v3364_v7, %v852_v56  ;;  %v2889_v61 = vsub.f32 %v3365_v34, %v851_v44 }
 0x1af   :  { %v709_v40 = vpop.xlane.xlu1 %708  ;;  %v707_v23 = vpop.xlane.xlu0 %706 }
 0x1b0   :  { %3366 = vst [vmem:[#allocation6_spill] sm:$0xff] %v2889_v61  ;;  %v822_v62 = vmul.f32 0.0078125, %v709_v40  ;;  %v821_v55 = vmul.f32 0.0078125, %v707_v23  ;;  %v980_v36 = vmul.f32 %v2886_v15, %v2886_v15  ;;  %v979_v2 = vmul.f32 %v2889_v61, %v2889_v61 }
 0x1b2   :  { %1089 = vadd.xlane.f32.xlu1 %v980_v36  ;;  %1023 = vadd.xlane.f32.xlu0 %v947_v45  ;;  %v2896_v8 = vsub.f32 %v3367_v33, %v822_v62  ;;  %v2903_v40 = vsub.f32 %v2687_v13, %v821_v55 }
 0x1b3   :  { %v773_v56 = vpop.xlane.xlu1 %772  ;;  %v771_v20 = vpop.xlane.xlu0 %770 }
 0x1b4   :  { %v854_v34 = vmul.f32 0.0078125, %v773_v56  ;;  %v853_v44 = vmul.f32 0.0078125, %v771_v20  ;;  %v950_v7 = vmul.f32 %v2896_v8, %v2896_v8  ;;  %v949_v20 = vmul.f32 %v2903_v40, %v2903_v40 }
 0x1b6   :  { %v2906_v23 = vsub.f32 %v2703_v59, %v854_v34  ;;  %1029 = vadd.xlane.f32.xlu1 %v950_v7  ;;  %1087 = vadd.xlane.f32.xlu0 %v979_v2  ;;  %v2909_v62 = vsub.f32 %v2709_v24, %v853_v44 }
 0x1b7   :  { %v713_v36 = vpop.xlane.xlu1 %712  ;;  %v711_v45 = vpop.xlane.xlu0 %710 }
 0x1b8   :  { %v824_v33 = vmul.f32 0.0078125, %v713_v36  ;;  %v823_v61 = vmul.f32 0.0078125, %v711_v45  ;;  %v982_v56 = vmul.f32 %v2906_v23, %v2906_v23  ;;  %v981_v24 = vmul.f32 %v2909_v62, %v2909_v62 }
 0x1ba   :  { %v2916_v13 = vsub.f32 %v2566_v1, %v824_v33  ;;  %1093 = vadd.xlane.f32.xlu1 %v982_v56  ;;  %1027 = vadd.xlane.f32.xlu0 %v949_v20  ;;  %v2921_v2 = vsub.f32 %v2572_v5, %v823_v61 }
 0x1bb   :  { %v777_v59 = vpop.xlane.xlu1 %776  ;;  %v775_v55 = vpop.xlane.xlu0 %774 }
 0x1bc   :  { %v856_v34 = vmul.f32 0.0078125, %v777_v59  ;;  %v855_v44 = vmul.f32 0.0078125, %v775_v55  ;;  %v952_v7 = vmul.f32 %v2916_v13, %v2916_v13  ;;  %v951_v61 = vmul.f32 %v2921_v2, %v2921_v2 }
 0x1be   :  { %v2926_v36 = vsub.f32 %v2569_v3, %v856_v34  ;;  %1033 = vadd.xlane.f32.xlu1 %v952_v7  ;;  %1091 = vadd.xlane.f32.xlu0 %v981_v24  ;;  %v2929_v1 = vsub.f32 %v2575_v6, %v855_v44 }
 0x1bf   :  { %v717_v45 = vpop.xlane.xlu1 %716  ;;  %v715_v33 = vpop.xlane.xlu0 %714 }
 0x1c0   :  { %v826_v56 = vmul.f32 0.0078125, %v717_v45  ;;  %v825_v20 = vmul.f32 0.0078125, %v715_v33  ;;  %v984_v5 = vmul.f32 %v2926_v36, %v2926_v36  ;;  %v983_v6 = vmul.f32 %v2929_v1, %v2929_v1 }
 0x1c2   :  { %v2936_v59 = vsub.f32 %v2586_v11, %v826_v56  ;;  %1097 = vadd.xlane.f32.xlu1 %v984_v5  ;;  %1031 = vadd.xlane.f32.xlu0 %v951_v61  ;;  %v2941_v24 = vsub.f32 %v2592_v18, %v825_v20 }
 0x1c3   :  { %v781_v3 = vpop.xlane.xlu1 %780  ;;  %v779_v55 = vpop.xlane.xlu0 %778 }
 0x1c4   :  { %v858_v34 = vmul.f32 0.0078125, %v781_v3  ;;  %v857_v44 = vmul.f32 0.0078125, %v779_v55  ;;  %v954_v7 = vmul.f32 %v2936_v59, %v2936_v59  ;;  %v953_v20 = vmul.f32 %v2941_v24, %v2941_v24 }
 0x1c6   :  { %v2946_v45 = vsub.f32 %v2589_v14, %v858_v34  ;;  %1037 = vadd.xlane.f32.xlu1 %v954_v7  ;;  %1095 = vadd.xlane.f32.xlu0 %v983_v6  ;;  %v2949_v11 = vsub.f32 %v2595_v19, %v857_v44 }
 0x1c7   :  { %v721_v33 = vpop.xlane.xlu1 %720  ;;  %v719_v56 = vpop.xlane.xlu0 %718 }
 0x1c8   :  { %v828_v5 = vmul.f32 0.0078125, %v721_v33  ;;  %v827_v61 = vmul.f32 0.0078125, %v719_v56  ;;  %v986_v18 = vmul.f32 %v2946_v45, %v2946_v45  ;;  %v985_v19 = vmul.f32 %v2949_v11, %v2949_v11 }
 0x1ca   :  { %v2956_v3 = vsub.f32 %v2606_v27, %v828_v5  ;;  %1101 = vadd.xlane.f32.xlu1 %v986_v18  ;;  %1035 = vadd.xlane.f32.xlu0 %v953_v20  ;;  %v2961_v6 = vsub.f32 %v2612_v32, %v827_v61 }
 0x1cb   :  { %v785_v14 = vpop.xlane.xlu1 %784  ;;  %v783_v55 = vpop.xlane.xlu0 %782 }
 0x1cc   :  { %v860_v34 = vmul.f32 0.0078125, %v785_v14  ;;  %v859_v44 = vmul.f32 0.0078125, %v783_v55  ;;  %v956_v7 = vmul.f32 %v2956_v3, %v2956_v3  ;;  %v955_v61 = vmul.f32 %v2961_v6, %v2961_v6 }
 0x1ce   :  { %v2966_v33 = vsub.f32 %v2609_v30, %v860_v34  ;;  %1041 = vadd.xlane.f32.xlu1 %v956_v7  ;;  %1099 = vadd.xlane.f32.xlu0 %v985_v19  ;;  %v2969_v27 = vsub.f32 %v2615_v35, %v859_v44 }
 0x1cf   :  { %v725_v56 = vpop.xlane.xlu1 %724  ;;  %v723_v5 = vpop.xlane.xlu0 %722 }
 0x1d0   :  { %v830_v18 = vmul.f32 0.0078125, %v725_v56  ;;  %v829_v20 = vmul.f32 0.0078125, %v723_v5  ;;  %v988_v32 = vmul.f32 %v2966_v33, %v2966_v33  ;;  %v987_v35 = vmul.f32 %v2969_v27, %v2969_v27 }
 0x1d2   :  { %v2976_v14 = vsub.f32 %v2626_v42, %v830_v18  ;;  %1105 = vadd.xlane.f32.xlu1 %v988_v32  ;;  %1039 = vadd.xlane.f32.xlu0 %v955_v61  ;;  %v2981_v19 = vsub.f32 %v2632_v46, %v829_v20 }
 0x1d3   :  { %v789_v30 = vpop.xlane.xlu1 %788  ;;  %v787_v55 = vpop.xlane.xlu0 %786 }
 0x1d4   :  { %v862_v34 = vmul.f32 0.0078125, %v789_v30  ;;  %v861_v44 = vmul.f32 0.0078125, %v787_v55  ;;  %v958_v7 = vmul.f32 %v2976_v14, %v2976_v14  ;;  %v957_v20 = vmul.f32 %v2981_v19, %v2981_v19 }
 0x1d6   :  { %v2986_v56 = vsub.f32 %v2629_v47, %v862_v34  ;;  %1045 = vadd.xlane.f32.xlu1 %v958_v7  ;;  %1103 = vadd.xlane.f32.xlu0 %v987_v35  ;;  %v2989_v42 = vsub.f32 %v2635_v0, %v861_v44 }
 0x1d7   :  { %v729_v5 = vpop.xlane.xlu1 %728  ;;  %v727_v18 = vpop.xlane.xlu0 %726 }
 0x1d8   :  { %v832_v32 = vmul.f32 0.0078125, %v729_v5  ;;  %v831_v61 = vmul.f32 0.0078125, %v727_v18  ;;  %v990_v46 = vmul.f32 %v2986_v56, %v2986_v56  ;;  %v989_v0 = vmul.f32 %v2989_v42, %v2989_v42 }
 0x1da   :  { %v2996_v30 = vsub.f32 %v2646_v10, %v832_v32  ;;  %1109 = vadd.xlane.f32.xlu1 %v990_v46  ;;  %1043 = vadd.xlane.f32.xlu0 %v957_v20  ;;  %v3001_v35 = vsub.f32 %v2652_v51, %v831_v61 }
 0x1db   :  { %v793_v47 = vpop.xlane.xlu1 %792  ;;  %v791_v55 = vpop.xlane.xlu0 %790 }
 0x1dc   :  { %3368 = vst [vmem:[#allocation7_spill] sm:$0xff] %v3001_v35  ;;  %v864_v34 = vmul.f32 0.0078125, %v793_v47  ;;  %v863_v44 = vmul.f32 0.0078125, %v791_v55  ;;  %v960_v7 = vmul.f32 %v2996_v30, %v2996_v30  ;;  %v959_v61 = vmul.f32 %v3001_v35, %v3001_v35 }
 0x1de   :  { %v3006_v5 = vsub.f32 %v2649_v17, %v864_v34  ;;  %1049 = vadd.xlane.f32.xlu1 %v960_v7  ;;  %1107 = vadd.xlane.f32.xlu0 %v989_v0  ;;  %v3009_v10 = vsub.f32 %v2655_v26, %v863_v44 }
 0x1df   :  { %v733_v18 = vpop.xlane.xlu1 %732  ;;  %v731_v32 = vpop.xlane.xlu0 %730 }
 0x1e0   :  { %3369 = vst [vmem:[#allocation8_spill] sm:$0xff] %v3006_v5  ;;  %3370 = vst [vmem:[#allocation9_spill] sm:$0xff] %v3009_v10  ;;  %v834_v46 = vmul.f32 0.0078125, %v733_v18  ;;  %v833_v20 = vmul.f32 0.0078125, %v731_v32  ;;  %v992_v51 = vmul.f32 %v3006_v5, %v3006_v5  ;;  %v991_v26 = vmul.f32 %v3009_v10, %v3009_v10 }
 0x1e2   :  { %v3016_v47 = vsub.f32 %v2668_v41, %v834_v46  ;;  %1113 = vadd.xlane.f32.xlu1 %v992_v51  ;;  %1047 = vadd.xlane.f32.xlu0 %v959_v61  ;;  %v3021_v0 = vsub.f32 %v2674_v52, %v833_v20 }
 0x1e3   :  { %v797_v17 = vpop.xlane.xlu1 %796  ;;  %v795_v55 = vpop.xlane.xlu0 %794 }
 0x1e4   :  { %3371 = vst [vmem:[#allocation10_spill] sm:$0xff] %v3016_v47  ;;  %3372 = vst [vmem:[#allocation23_spill] sm:$0xff] %v3021_v0  ;;  %v866_v34 = vmul.f32 0.0078125, %v797_v17  ;;  %v865_v44 = vmul.f32 0.0078125, %v795_v55  ;;  %v962_v7 = vmul.f32 %v3016_v47, %v3016_v47  ;;  %v961_v20 = vmul.f32 %v3021_v0, %v3021_v0  ;;  %v3375_v17 = vld [vmem:[#allocation11_spill] sm:$0xff] }
 0x1e6   :  { %v3026_v18 = vsub.f32 %v2671_v63, %v866_v34  ;;  %1053 = vadd.xlane.f32.xlu1 %v962_v7  ;;  %1111 = vadd.xlane.f32.xlu0 %v991_v26  ;;  %v3029_v41 = vsub.f32 %v2677_v9, %v865_v44  ;;  %v3377_v34 = vld [vmem:[#allocation13_spill] sm:$0xff] }
 0x1e7   :  { %v737_v32 = vpop.xlane.xlu1 %736  ;;  %v735_v46 = vpop.xlane.xlu0 %734 }
 0x1e8   :  { %3373 = vst [vmem:[#allocation24_spill] sm:$0xff] %v3026_v18  ;;  %3374 = vst [vmem:[#allocation25_spill] sm:$0xff] %v3029_v41  ;;  %v836_v51 = vmul.f32 0.0078125, %v737_v32  ;;  %v835_v61 = vmul.f32 0.0078125, %v735_v46  ;;  %v994_v52 = vmul.f32 %v3026_v18, %v3026_v18  ;;  %v993_v9 = vmul.f32 %v3029_v41, %v3029_v41  ;;  %v3379_v18 = vld [vmem:[#allocation12_spill] sm:$0xff] }
 0x1ea   :  { %v3036_v55 = vsub.f32 %v3375_v17, %v836_v51  ;;  %1117 = vadd.xlane.f32.xlu1 %v994_v52  ;;  %1051 = vadd.xlane.f32.xlu0 %v961_v20  ;;  %v3041_v44 = vsub.f32 %v3377_v34, %v835_v61 }
 0x1eb   :  { %v801_v63 = vpop.xlane.xlu1 %800  ;;  %v799_v26 = vpop.xlane.xlu0 %798 }
 0x1ec   :  { %3376 = vst [vmem:[#allocation11_spill] sm:$0xff] %v3036_v55  ;;  %3378 = vst [vmem:[#allocation13_spill] sm:$0xff] %v3041_v44  ;;  %v868_v7 = vmul.f32 0.0078125, %v801_v63  ;;  %v867_v32 = vmul.f32 0.0078125, %v799_v26  ;;  %v964_v46 = vmul.f32 %v3036_v55, %v3036_v55  ;;  %v963_v63 = vmul.f32 %v3041_v44, %v3041_v44  ;;  %v3382_v26 = vld [vmem:[#allocation14_spill] sm:$0xff] }
 0x1ee   :  { %v3046_v0 = vsub.f32 %v3379_v18, %v868_v7  ;;  %1057 = vadd.xlane.f32.xlu1 %v964_v46  ;;  %1115 = vadd.xlane.f32.xlu0 %v993_v9  ;;  %v3049_v51 = vsub.f32 %v2699_v53, %v867_v32  ;;  %v3384_v7 = vld [vmem:[#allocation16_spill] sm:$0xff] }
 0x1ef   :  { %v741_v52 = vpop.xlane.xlu1 %740  ;;  %v739_v20 = vpop.xlane.xlu0 %738 }
 0x1f0   :  { %3380 = vst [vmem:[#allocation12_spill] sm:$0xff] %v3046_v0  ;;  %3381 = vst [vmem:[#allocation26_spill] sm:$0xff] %v3049_v51  ;;  %v838_v17 = vmul.f32 0.0078125, %v741_v52  ;;  %v837_v41 = vmul.f32 0.0078125, %v739_v20  ;;  %v996_v61 = vmul.f32 %v3046_v0, %v3046_v0  ;;  %v995_v53 = vmul.f32 %v3049_v51, %v3049_v51  ;;  %v3386_v0 = vld [vmem:[#allocation15_spill] sm:$0xff] }
 0x1f2   :  { %v3056_v34 = vsub.f32 %v3382_v26, %v838_v17  ;;  %1121 = vadd.xlane.f32.xlu1 %v996_v61  ;;  %1055 = vadd.xlane.f32.xlu0 %v963_v63  ;;  %v3061_v32 = vsub.f32 %v3384_v7, %v837_v41  ;;  %v3388_v17 = vld [vmem:[#allocation17_spill] sm:$0xff] }
 0x1f3   :  { %v805_v18 = vpop.xlane.xlu1 %804  ;;  %v803_v9 = vpop.xlane.xlu0 %802 }
 0x1f4   :  { %3383 = vst [vmem:[#allocation14_spill] sm:$0xff] %v3056_v34  ;;  %3385 = vst [vmem:[#allocation16_spill] sm:$0xff] %v3061_v32  ;;  %v870_v46 = vmul.f32 0.0078125, %v805_v18  ;;  %v869_v52 = vmul.f32 0.0078125, %v803_v9  ;;  %v966_v20 = vmul.f32 %v3056_v34, %v3056_v34  ;;  %v965_v41 = vmul.f32 %v3061_v32, %v3061_v32 }
 0x1f6   :  { %v3066_v44 = vsub.f32 %v3386_v0, %v870_v46  ;;  %1061 = vadd.xlane.f32.xlu1 %v966_v20  ;;  %1119 = vadd.xlane.f32.xlu0 %v995_v53  ;;  %v3069_v61 = vsub.f32 %v3388_v17, %v869_v52 }
 0x1f8   :  { %3387 = vst [vmem:[#allocation15_spill] sm:$0xff] %v3066_v44  ;;  %3389 = vst [vmem:[#allocation17_spill] sm:$0xff] %v3069_v61  ;;  %v998_v63 = vmul.f32 %v3066_v44, %v3066_v44  ;;  %v997_v26 = vmul.f32 %v3069_v61, %v3069_v61 }
 0x1fa   :  { %1125 = vadd.xlane.f32.xlu1 %v998_v63  ;;  %1059 = vadd.xlane.f32.xlu0 %v965_v41 }
 0x1fe   :  { %1123 = vadd.xlane.f32.xlu0 %v997_v26 }
 0x20b   :  { %v1002_v18 = vpop.xlane.xlu1 %1001 }
 0x20c   :  { %v1128_v0 = vmul.f32 0.0078125, %v1002_v18 }
 0x20e   :  { %v1192_v9 = vadd.f32 1e-05, %v1128_v0 }
 0x20f   :  { %v1066_v7 = vpop.xlane.xlu1 %1065  ;;  %v1000_v53 = vpop.xlane.xlu0 %999 }
 0x210   :  { %2011 = vrsqrt.f32 %v1192_v9  ;;  %v1160_v46 = vmul.f32 0.0078125, %v1066_v7  ;;  %v1127_v52 = vmul.f32 0.0078125, %v1000_v53  ;;  %v3080_v9 = vld [vmem:[%s3304_s3] ss:$0 sm:$0xff] }
 0x212   :  { %v1224_v20 = vadd.f32 1e-05, %v1160_v46  ;;  %v1191_v17 = vadd.f32 1e-05, %v1127_v52 }
 0x213   :  { %v1006_v44 = vpop.xlane.xlu1 %1005  ;;  %v1064_v51 = vpop.xlane.xlu0 %1063 }
 0x214   :  { %2013 = vrsqrt.f32 %v1224_v20  ;;  %v1130_v32 = vmul.f32 0.0078125, %v1006_v44  ;;  %v1159_v63 = vmul.f32 0.0078125, %v1064_v51 }
 0x215   :  { %2015 = vrsqrt.f32 %v1191_v17 }
 0x216   :  { %v1194_v41 = vadd.f32 1e-05, %v1130_v32  ;;  %v1223_v34 = vadd.f32 1e-05, %v1159_v63  ;;  %v3086_v32 = vld [vmem:[%s3305_s4] ss:$0 sm:$0xff] }
 0x217   :  { %v1070_v61 = vpop.xlane.xlu1 %1069  ;;  %v1004_v26 = vpop.xlane.xlu0 %1003 }
 0x218   :  { %2017 = vrsqrt.f32 %v1194_v41  ;;  %v1162_v18 = vmul.f32 0.0078125, %v1070_v61  ;;  %v1129_v0 = vmul.f32 0.0078125, %v1004_v26 }
 0x219   :  { %2019 = vrsqrt.f32 %v1223_v34 }
 0x21a   :  { %v2012_v55 = vpop.eup %2011  ;;  %v1226_v7 = vadd.f32 1e-05, %v1162_v18  ;;  %v1193_v53 = vadd.f32 1e-05, %v1129_v0 }
 0x21b   :  { %v1320_v44 = vmul.f32 %v2012_v55, %v2758_v29  ;;  %v1010_v51 = vpop.xlane.xlu1 %1009  ;;  %v1068_v46 = vpop.xlane.xlu0 %1067 }
 0x21c   :  { %2021 = vrsqrt.f32 %v1226_v7  ;;  %v1132_v61 = vmul.f32 0.0078125, %v1010_v51  ;;  %v1161_v34 = vmul.f32 0.0078125, %v1068_v46 }
 0x21d   :  { %v1391_v52 = vmul.f32 %v3080_v9, %v1320_v44  ;;  %2023 = vrsqrt.f32 %v1193_v53 }
 0x21e   :  { %v2014_v20 = vpop.eup %2013  ;;  %v1196_v17 = vadd.f32 1e-05, %v1132_v61  ;;  %v1225_v63 = vadd.f32 1e-05, %v1161_v34 }
 0x21f   :  { %v2016_v41 = vpop.eup %2015  ;;  %v1462_v26 = vadd.f32 %v3086_v32, %v1391_v52  ;;  %v1352_v29 = vmul.f32 %v2014_v20, %v2763_v58  ;;  %v1074_v55 = vpop.xlane.xlu1 %1073  ;;  %v3390_v20 = vld [vmem:[#allocation18_spill] sm:$0xff] }
 0x220   :  { %v1008_v18 = vpop.xlane.xlu0 %1007  ;;  %v1319_v0 = vmul.f32 %v2016_v41, %v2766_v54  ;;  %2025 = vrsqrt.f32 %v1196_v17  ;;  %v1164_v10 = vmul.f32 0.0078125, %v1074_v55 }
 0x221   :  { %v1131_v7 = vmul.f32 0.0078125, %v1008_v18  ;;  %v1526_v51 = vmul.f32 0.2, %v1462_v26  ;;  %v1423_v46 = vmul.f32 %v3080_v9, %v1352_v29  ;;  %2027 = vrsqrt.f32 %v1225_v63 }
 0x222   :  { %v2018_v53 = vpop.eup %2017  ;;  %v1390_v44 = vmul.f32 %v3080_v9, %v1319_v0  ;;  %v1228_v61 = vadd.f32 1e-05, %v1164_v10 }
 0x223   :  { %v1195_v34 = vadd.f32 1e-05, %v1131_v7  ;;  %v2020_v47 = vpop.eup %2019  ;;  %v1590_v52 = vmax.f32 %v1462_v26, %v1526_v51  ;;  %v1494_v58 = vadd.f32 %v3086_v32, %v1423_v46  ;;  %v1322_v35 = vmul.f32 %v2018_v53, %v3390_v20  ;;  %v1014_v5 = vpop.xlane.xlu1 %1013 }
 0x224   :  { %v1072_v54 = vpop.xlane.xlu0 %1071  ;;  %v1461_v17 = vadd.f32 %v3086_v32, %v1390_v44  ;;  %v1351_v41 = vmul.f32 %v2020_v47, %v2776_v16  ;;  %2029 = vrsqrt.f32 %v1228_v61  ;;  %v1134_v29 = vmul.f32 0.0078125, %v1014_v5 }
 0x225   :  { %1654 = vst [vmem:[#allocation2 + $0x8] sm:$0xff] %v1590_v52  ;;  %v1558_v63 = vmul.f32 0.2, %v1494_v58  ;;  %v1393_v55 = vmul.f32 %v3080_v9, %v1322_v35  ;;  %2031 = vrsqrt.f32 %v1195_v34  ;;  %v1163_v10 = vmul.f32 0.0078125, %v1072_v54 }
 0x226   :  { %v2022_v18 = vpop.eup %2021  ;;  %v1525_v26 = vmul.f32 0.2, %v1461_v17  ;;  %v1422_v0 = vmul.f32 %v3080_v9, %v1351_v41  ;;  %v1198_v7 = vadd.f32 1e-05, %v1134_v29 }
 0x227   :  { %v2024_v51 = vpop.eup %2023  ;;  %v1622_v46 = vmax.f32 %v1494_v58, %v1558_v63  ;;  %v1464_v53 = vadd.f32 %v3086_v32, %v1393_v55  ;;  %v1354_v44 = vmul.f32 %v2022_v18, %v2783_v39  ;;  %v1227_v16 = vadd.f32 1e-05, %v1163_v10  ;;  %v1078_v47 = vpop.xlane.xlu1 %1077 }
 0x228   :  { %v1012_v5 = vpop.xlane.xlu0 %1011  ;;  %v1589_v61 = vmax.f32 %v1461_v17, %v1525_v26  ;;  %v1493_v52 = vadd.f32 %v3086_v32, %v1422_v0  ;;  %v1321_v35 = vmul.f32 %v2024_v51, %v2786_v12  ;;  %2033 = vrsqrt.f32 %v1198_v7 }
 0x229   :  { %1686 = vst [vmem:[#allocation2 + $0x108] sm:$0xff] %v1622_v46  ;;  %v1528_v34 = vmul.f32 0.2, %v1464_v53  ;;  %v1425_v20 = vmul.f32 %v3080_v9, %v1354_v44  ;;  %2035 = vrsqrt.f32 %v1227_v16  ;;  %v1166_v54 = vmul.f32 0.0078125, %v1078_v47 }
 0x22a   :  { %v2026_v58 = vpop.eup %2025  ;;  %1653 = vst [vmem:[#allocation2] sm:$0xff] %v1589_v61  ;;  %v1557_v41 = vmul.f32 0.2, %v1493_v52  ;;  %v1392_v39 = vmul.f32 %v3080_v9, %v1321_v35  ;;  %v1133_v29 = vmul.f32 0.0078125, %v1012_v5 }
 0x22b   :  { %v2028_v63 = vpop.eup %2027  ;;  %v1592_v55 = vmax.f32 %v1464_v53, %v1528_v34  ;;  %v1496_v17 = vadd.f32 %v3086_v32, %v1425_v20  ;;  %v1324_v10 = vmul.f32 %v2026_v58, %v2796_v25  ;;  %v1230_v12 = vadd.f32 1e-05, %v1166_v54  ;;  %v1018_v18 = vpop.xlane.xlu1 %1017 }
 0x22c   :  { %v1076_v26 = vpop.xlane.xlu0 %1075  ;;  %v1621_v0 = vmax.f32 %v1493_v52, %v1557_v41  ;;  %v1463_v7 = vadd.f32 %v3086_v32, %v1392_v39  ;;  %v1353_v51 = vmul.f32 %v2028_v63, %v2789_v57  ;;  %v1197_v46 = vadd.f32 1e-05, %v1133_v29 }
 0x22d   :  { %1656 = vst [vmem:[#allocation2 + $0x18] sm:$0xff] %v1592_v55  ;;  %v1560_v44 = vmul.f32 0.2, %v1496_v17  ;;  %v1395_v16 = vmul.f32 %v3080_v9, %v1324_v10  ;;  %2037 = vrsqrt.f32 %v1230_v12  ;;  %v1136_v47 = vmul.f32 0.0078125, %v1018_v18 }
 0x22e   :  { %v2030_v53 = vpop.eup %2029  ;;  %1685 = vst [vmem:[#allocation2 + $0x100] sm:$0xff] %v1621_v0  ;;  %v1527_v5 = vmul.f32 0.2, %v1463_v7  ;;  %v1424_v25 = vmul.f32 %v3080_v9, %v1353_v51  ;;  %2039 = vrsqrt.f32 %v1197_v46  ;;  %v1165_v61 = vmul.f32 0.0078125, %v1076_v26 }
 0x22f   :  { %v2032_v35 = vpop.eup %2031  ;;  %v1624_v52 = vmax.f32 %v1496_v17, %v1560_v44  ;;  %v1466_v34 = vadd.f32 %v3086_v32, %v1395_v16  ;;  %v1356_v57 = vmul.f32 %v2030_v53, %v2806_v28  ;;  %v1200_v20 = vadd.f32 1e-05, %v1136_v47  ;;  %v1082_v54 = vpop.xlane.xlu1 %1081 }
 0x230   :  { %v1016_v58 = vpop.xlane.xlu0 %1015  ;;  %v1591_v41 = vmax.f32 %v1463_v7, %v1527_v5  ;;  %v1495_v39 = vadd.f32 %v3086_v32, %v1424_v25  ;;  %v1323_v29 = vmul.f32 %v2032_v35, %v2803_v48  ;;  %v1229_v63 = vadd.f32 1e-05, %v1165_v61 }
 0x231   :  { %1688 = vst [vmem:[#allocation2 + $0x118] sm:$0xff] %v1624_v52  ;;  %v1530_v55 = vmul.f32 0.2, %v1466_v34  ;;  %v1427_v10 = vmul.f32 %v3080_v9, %v1356_v57  ;;  %2041 = vrsqrt.f32 %v1200_v20  ;;  %v1168_v12 = vmul.f32 0.0078125, %v1082_v54 }
 0x232   :  { %v2034_v17 = vpop.eup %2033  ;;  %1655 = vst [vmem:[#allocation2 + $0x10] sm:$0xff] %v1591_v41  ;;  %v1559_v18 = vmul.f32 0.2, %v1495_v39  ;;  %v1394_v28 = vmul.f32 %v3080_v9, %v1323_v29  ;;  %2043 = vrsqrt.f32 %v1229_v63  ;;  %v1135_v26 = vmul.f32 0.0078125, %v1016_v58 }
 0x233   :  { %v2036_v0 = vpop.eup %2035  ;;  %v1594_v7 = vmax.f32 %v1466_v34, %v1530_v55  ;;  %v1498_v51 = vadd.f32 %v3086_v32, %v1427_v10  ;;  %v1326_v48 = vmul.f32 %v2034_v17, %v2816_v38  ;;  %v1232_v46 = vadd.f32 1e-05, %v1168_v12  ;;  %v1022_v44 = vpop.xlane.xlu1 %1021 }
 0x234   :  { %v1080_v16 = vpop.xlane.xlu0 %1079  ;;  %v1623_v47 = vmax.f32 %v1495_v39, %v1559_v18  ;;  %v1465_v53 = vadd.f32 %v3086_v32, %v1394_v28  ;;  %v1355_v5 = vmul.f32 %v2036_v0, %v2809_v31  ;;  %v1199_v25 = vadd.f32 1e-05, %v1135_v26 }
 0x235   :  { %1658 = vst [vmem:[#allocation2 + $0x28] sm:$0xff] %v1594_v7  ;;  %v1562_v61 = vmul.f32 0.2, %v1498_v51  ;;  %v1397_v35 = vmul.f32 %v3080_v9, %v1326_v48  ;;  %2045 = vrsqrt.f32 %v1232_v46  ;;  %v1138_v52 = vmul.f32 0.0078125, %v1022_v44 }
 0x236   :  { %1687 = vst [vmem:[#allocation2 + $0x110] sm:$0xff] %v1623_v47  ;;  %v1529_v34 = vmul.f32 0.2, %v1465_v53  ;;  %v1426_v57 = vmul.f32 %v3080_v9, %v1355_v5  ;;  %2047 = vrsqrt.f32 %v1199_v25  ;;  %v1167_v38 = vmul.f32 0.0078125, %v1080_v16 }
 0x237   :  { %v2038_v20 = vpop.eup %2037  ;;  %v1626_v54 = vmax.f32 %v1498_v51, %v1562_v61  ;;  %v1468_v58 = vadd.f32 %v3086_v32, %v1397_v35  ;;  %v1202_v41 = vadd.f32 1e-05, %v1138_v52  ;;  %v1086_v39 = vpop.xlane.xlu1 %1085 }
 0x238   :  { %v1020_v31 = vpop.xlane.xlu0 %1019  ;;  %v2040_v29 = vpop.eup %2039  ;;  %v1593_v63 = vmax.f32 %v1465_v53, %v1529_v34  ;;  %v1497_v55 = vadd.f32 %v3086_v32, %v1426_v57  ;;  %v1358_v10 = vmul.f32 %v2038_v20, %v2826_v37  ;;  %v1231_v12 = vadd.f32 1e-05, %v1167_v38 }
 0x239   :  { %1690 = vst [vmem:[#allocation2 + $0x128] sm:$0xff] %v1626_v54  ;;  %v1532_v17 = vmul.f32 0.2, %v1468_v58  ;;  %v1325_v18 = vmul.f32 %v2040_v29, %v2823_v4  ;;  %2049 = vrsqrt.f32 %v1202_v41  ;;  %v1170_v28 = vmul.f32 0.0078125, %v1086_v39 }
 0x23a   :  { %1657 = vst [vmem:[#allocation2 + $0x20] sm:$0xff] %v1593_v63  ;;  %v1561_v26 = vmul.f32 0.2, %v1497_v55  ;;  %v1429_v0 = vmul.f32 %v3080_v9, %v1358_v10  ;;  %2051 = vrsqrt.f32 %v1231_v12  ;;  %v1137_v7 = vmul.f32 0.0078125, %v1020_v31 }
 0x23b   :  { %v2042_v51 = vpop.eup %2041  ;;  %v1596_v48 = vmax.f32 %v1468_v58, %v1532_v17  ;;  %v1396_v46 = vmul.f32 %v3080_v9, %v1325_v18  ;;  %v1234_v44 = vadd.f32 1e-05, %v1170_v28  ;;  %v1026_v16 = vpop.xlane.xlu1 %1025 }
 0x23c   :  { %v1084_v37 = vpop.xlane.xlu0 %1083  ;;  %v2044_v47 = vpop.eup %2043  ;;  %v1625_v53 = vmax.f32 %v1497_v55, %v1561_v26  ;;  %v1500_v5 = vadd.f32 %v3086_v32, %v1429_v0  ;;  %v1328_v4 = vmul.f32 %v2042_v51, %v2836_v50  ;;  %v1201_v25 = vadd.f32 1e-05, %v1137_v7 }
 0x23d   :  { %1660 = vst [vmem:[#allocation2 + $0x38] sm:$0xff] %v1596_v48  ;;  %v1467_v61 = vadd.f32 %v3086_v32, %v1396_v46  ;;  %v1357_v35 = vmul.f32 %v2044_v47, %v2829_v21  ;;  %2053 = vrsqrt.f32 %v1234_v44  ;;  %v1140_v52 = vmul.f32 0.0078125, %v1026_v16 }
 0x23e   :  { %1689 = vst [vmem:[#allocation2 + $0x120] sm:$0xff] %v1625_v53  ;;  %v1564_v34 = vmul.f32 0.2, %v1500_v5  ;;  %v1399_v57 = vmul.f32 %v3080_v9, %v1328_v4  ;;  %2055 = vrsqrt.f32 %v1201_v25  ;;  %v1169_v38 = vmul.f32 0.0078125, %v1084_v37  ;;  %v3392_v25 = vld [vmem:[#allocation19_spill] sm:$0xff] }
 0x23f   :  { %v2046_v20 = vpop.eup %2045  ;;  %v1531_v54 = vmul.f32 0.2, %v1467_v61  ;;  %v1428_v58 = vmul.f32 %v3080_v9, %v1357_v35  ;;  %v1204_v41 = vadd.f32 1e-05, %v1140_v52  ;;  %v1090_v50 = vpop.xlane.xlu1 %1089 }
 0x240   :  { %v1024_v39 = vpop.xlane.xlu0 %1023  ;;  %v2048_v31 = vpop.eup %2047  ;;  %v1628_v29 = vmax.f32 %v1500_v5, %v1564_v34  ;;  %v1470_v63 = vadd.f32 %v3086_v32, %v1399_v57  ;;  %v1360_v21 = vmul.f32 %v2046_v20, %v2846_v49  ;;  %v1233_v55 = vadd.f32 1e-05, %v1169_v38 }
 0x241   :  { %v1595_v10 = vmax.f32 %v1467_v61, %v1531_v54  ;;  %v1499_v12 = vadd.f32 %v3086_v32, %v1428_v58  ;;  %v1327_v17 = vmul.f32 %v2048_v31, %v2843_v22  ;;  %2057 = vrsqrt.f32 %v1204_v41  ;;  %v3391_v22 = vld [vmem:[#allocation20_spill] sm:$0xff] }
 0x242   :  { %1692 = vst [vmem:[#allocation2 + $0x138] sm:$0xff] %v1628_v29  ;;  %v1534_v18 = vmul.f32 0.2, %v1470_v63  ;;  %v1431_v28 = vmul.f32 %v3080_v9, %v1360_v21  ;;  %2059 = vrsqrt.f32 %v1233_v55  ;;  %v1172_v26 = vmul.f32 0.0078125, %v1090_v50 }
 0x243   :  { %v2050_v0 = vpop.eup %2049  ;;  %1659 = vst [vmem:[#allocation2 + $0x30] sm:$0xff] %v1595_v10  ;;  %v1563_v7 = vmul.f32 0.2, %v1499_v12  ;;  %v1398_v51 = vmul.f32 %v3080_v9, %v1327_v17  ;;  %v1139_v48 = vmul.f32 0.0078125, %v1024_v39  ;;  %v1030_v49 = vpop.xlane.xlu1 %1029  ;;  %v3394_v17 = vld [vmem:[#allocation21_spill] sm:$0xff] }
 0x244   :  { %v1088_v46 = vpop.xlane.xlu0 %1087  ;;  %v2052_v44 = vpop.eup %2051  ;;  %v1598_v16 = vmax.f32 %v1470_v63, %v1534_v18  ;;  %v1502_v37 = vadd.f32 %v3086_v32, %v1431_v28  ;;  %v1330_v47 = vmul.f32 %v2050_v0, %v3391_v22  ;;  %v1236_v53 = vadd.f32 1e-05, %v1172_v26  ;;  %v3393_v63 = vld [vmem:[#allocation22_spill] sm:$0xff] }
 0x245   :  { %v1627_v5 = vmax.f32 %v1499_v12, %v1563_v7  ;;  %v1469_v4 = vadd.f32 %v3086_v32, %v1398_v51  ;;  %v1359_v61 = vmul.f32 %v2052_v44, %v3392_v25  ;;  %v1203_v35 = vadd.f32 1e-05, %v1139_v48 }
 0x246   :  { %1662 = vst [vmem:[#allocation2 + $0x48] sm:$0xff] %v1598_v16  ;;  %v1566_v52 = vmul.f32 0.2, %v1502_v37  ;;  %v1401_v34 = vmul.f32 %v3080_v9, %v1330_v47  ;;  %2061 = vrsqrt.f32 %v1236_v53  ;;  %v1142_v57 = vmul.f32 0.0078125, %v1030_v49 }
 0x247   :  { %v2054_v38 = vpop.eup %2053  ;;  %1691 = vst [vmem:[#allocation2 + $0x130] sm:$0xff] %v1627_v5  ;;  %v1533_v20 = vmul.f32 0.2, %v1469_v4  ;;  %v1430_v54 = vmul.f32 %v3080_v9, %v1359_v61  ;;  %2063 = vrsqrt.f32 %v1203_v35  ;;  %v1171_v58 = vmul.f32 0.0078125, %v1088_v46  ;;  %v1094_v41 = vpop.xlane.xlu1 %1093  ;;  %v3395_v61 = vld [vmem:[#allocation5_spill] sm:$0xff] }
 0x248   :  { %v1028_v50 = vpop.xlane.xlu0 %1027  ;;  %v2056_v39 = vpop.eup %2055  ;;  %v1630_v31 = vmax.f32 %v1502_v37, %v1566_v52  ;;  %v1472_v29 = vadd.f32 %v3086_v32, %v1401_v34  ;;  %v1362_v21 = vmul.f32 %v2054_v38, %v3393_v63  ;;  %v1206_v55 = vadd.f32 1e-05, %v1142_v57 }
 0x249   :  { %v1597_v10 = vmax.f32 %v1469_v4, %v1533_v20  ;;  %v1501_v12 = vadd.f32 %v3086_v32, %v1430_v54  ;;  %v1329_v18 = vmul.f32 %v2056_v39, %v3394_v17  ;;  %v1235_v28 = vadd.f32 1e-05, %v1171_v58 }
 0x24a   :  { %1694 = vst [vmem:[#allocation2 + $0x148] sm:$0xff] %v1630_v31  ;;  %v1536_v26 = vmul.f32 0.2, %v1472_v29  ;;  %v1433_v0 = vmul.f32 %v3080_v9, %v1362_v21  ;;  %2065 = vrsqrt.f32 %v1206_v55  ;;  %v1174_v7 = vmul.f32 0.0078125, %v1094_v41 }
 0x24b   :  { %v2058_v51 = vpop.eup %2057  ;;  %1661 = vst [vmem:[#allocation2 + $0x40] sm:$0xff] %v1597_v10  ;;  %v1565_v48 = vmul.f32 0.2, %v1501_v12  ;;  %v1400_v49 = vmul.f32 %v3080_v9, %v1329_v18  ;;  %2067 = vrsqrt.f32 %v1235_v28  ;;  %v1141_v46 = vmul.f32 0.0078125, %v1028_v50  ;;  %v1034_v44 = vpop.xlane.xlu1 %1033 }
 0x24c   :  { %v1092_v16 = vpop.xlane.xlu0 %1091  ;;  %v2060_v37 = vpop.eup %2059  ;;  %v1600_v22 = vmax.f32 %v1472_v29, %v1536_v26  ;;  %v1504_v47 = vadd.f32 %v3086_v32, %v1433_v0  ;;  %v1332_v53 = vmul.f32 %v2058_v51, %v2876_v60  ;;  %v1238_v5 = vadd.f32 1e-05, %v1174_v7 }
 0x24d   :  { %v1629_v4 = vmax.f32 %v1501_v12, %v1565_v48  ;;  %v1471_v25 = vadd.f32 %v3086_v32, %v1400_v49  ;;  %v1361_v35 = vmul.f32 %v2060_v37, %v3395_v61  ;;  %v1205_v52 = vadd.f32 1e-05, %v1141_v46 }
 0x24e   :  { %1664 = vst [vmem:[#allocation2 + $0x58] sm:$0xff] %v1600_v22  ;;  %v1568_v34 = vmul.f32 0.2, %v1504_v47  ;;  %v1403_v57 = vmul.f32 %v3080_v9, %v1332_v53  ;;  %2069 = vrsqrt.f32 %v1238_v5  ;;  %v1144_v38 = vmul.f32 0.0078125, %v1034_v44 }
 0x24f   :  { %1693 = vst [vmem:[#allocation2 + $0x140] sm:$0xff] %v1629_v4  ;;  %v1535_v20 = vmul.f32 0.2, %v1471_v25  ;;  %v1432_v54 = vmul.f32 %v3080_v9, %v1361_v35  ;;  %2071 = vrsqrt.f32 %v1205_v52  ;;  %v1173_v58 = vmul.f32 0.0078125, %v1092_v16  ;;  %v1098_v60 = vpop.xlane.xlu1 %1097  ;;  %v3396_v4 = vld [vmem:[#allocation6_spill] sm:$0xff] }
 0x250   :  { %v1032_v41 = vpop.xlane.xlu0 %1031  ;;  %v2062_v50 = vpop.eup %2061  ;;  %v1632_v39 = vmax.f32 %v1504_v47, %v1568_v34  ;;  %v1474_v31 = vadd.f32 %v3086_v32, %v1403_v57  ;;  %v1208_v29 = vadd.f32 1e-05, %v1144_v38  ;;  %v1176_v63 = vmul.f32 0.0078125, %v1098_v60 }
 0x251   :  { %v2064_v21 = vpop.eup %2063  ;;  %v1599_v55 = vmax.f32 %v1471_v25, %v1535_v20  ;;  %v1503_v10 = vadd.f32 %v3086_v32, %v1432_v54  ;;  %v1364_v12 = vmul.f32 %v2062_v50, %v2886_v15  ;;  %v1237_v17 = vadd.f32 1e-05, %v1173_v58 }
 0x252   :  { %1696 = vst [vmem:[#allocation2 + $0x158] sm:$0xff] %v1632_v39  ;;  %v1538_v18 = vmul.f32 0.2, %v1474_v31  ;;  %v1331_v28 = vmul.f32 %v2064_v21, %v2883_v43  ;;  %2073 = vrsqrt.f32 %v1208_v29  ;;  %v1240_v26 = vadd.f32 1e-05, %v1176_v63 }
 0x253   :  { %1663 = vst [vmem:[#allocation2 + $0x50] sm:$0xff] %v1599_v55  ;;  %v1567_v0 = vmul.f32 0.2, %v1503_v10  ;;  %v1435_v7 = vmul.f32 %v3080_v9, %v1364_v12  ;;  %2075 = vrsqrt.f32 %v1237_v17  ;;  %v1143_v51 = vmul.f32 0.0078125, %v1032_v41  ;;  %v1038_v48 = vpop.xlane.xlu1 %1037 }
 0x254   :  { %v1096_v49 = vpop.xlane.xlu0 %1095  ;;  %v2066_v46 = vpop.eup %2065  ;;  %v1602_v44 = vmax.f32 %v1474_v31, %v1538_v18  ;;  %v1402_v16 = vmul.f32 %v3080_v9, %v1331_v28  ;;  %2077 = vrsqrt.f32 %v1240_v26  ;;  %v1146_v15 = vmul.f32 0.0078125, %v1038_v48 }
 0x255   :  { %v2068_v37 = vpop.eup %2067  ;;  %v1631_v22 = vmax.f32 %v1503_v10, %v1567_v0  ;;  %v1506_v43 = vadd.f32 %v3086_v32, %v1435_v7  ;;  %v1334_v47 = vmul.f32 %v2066_v46, %v2896_v8  ;;  %v1207_v53 = vadd.f32 1e-05, %v1143_v51 }
 0x256   :  { %1666 = vst [vmem:[#allocation2 + $0x68] sm:$0xff] %v1602_v44  ;;  %v1473_v5 = vadd.f32 %v3086_v32, %v1402_v16  ;;  %v1363_v25 = vmul.f32 %v2068_v37, %v3396_v4  ;;  %v1210_v61 = vadd.f32 1e-05, %v1146_v15  ;;  %v1175_v35 = vmul.f32 0.0078125, %v1096_v49 }
 0x257   :  { %1695 = vst [vmem:[#allocation2 + $0x150] sm:$0xff] %v1631_v22  ;;  %v1570_v52 = vmul.f32 0.2, %v1506_v43  ;;  %v1405_v34 = vmul.f32 %v3080_v9, %v1334_v47  ;;  %2079 = vrsqrt.f32 %v1207_v53  ;;  %v1102_v57 = vpop.xlane.xlu1 %1101 }
 0x258   :  { %v1036_v38 = vpop.xlane.xlu0 %1035  ;;  %v2070_v20 = vpop.eup %2069  ;;  %v1537_v54 = vmul.f32 0.2, %v1473_v5  ;;  %v1434_v58 = vmul.f32 %v3080_v9, %v1363_v25  ;;  %2081 = vrsqrt.f32 %v1210_v61  ;;  %v1239_v8 = vadd.f32 1e-05, %v1175_v35 }
 0x259   :  { %v2072_v60 = vpop.eup %2071  ;;  %v1634_v41 = vmax.f32 %v1506_v43, %v1570_v52  ;;  %v1476_v50 = vadd.f32 %v3086_v32, %v1405_v34  ;;  %v1366_v39 = vmul.f32 %v2070_v20, %v2906_v23  ;;  %v1178_v31 = vmul.f32 0.0078125, %v1102_v57 }
 0x25a   :  { %v1601_v29 = vmax.f32 %v1473_v5, %v1537_v54  ;;  %v1505_v63 = vadd.f32 %v3086_v32, %v1434_v58  ;;  %v1333_v21 = vmul.f32 %v2072_v60, %v2903_v40  ;;  %2083 = vrsqrt.f32 %v1239_v8 }
 0x25b   :  { %1698 = vst [vmem:[#allocation2 + $0x168] sm:$0xff] %v1634_v41  ;;  %v1540_v55 = vmul.f32 0.2, %v1476_v50  ;;  %v1437_v10 = vmul.f32 %v3080_v9, %v1366_v39  ;;  %v1242_v12 = vadd.f32 1e-05, %v1178_v31  ;;  %v1145_v17 = vmul.f32 0.0078125, %v1036_v38  ;;  %v1042_v18 = vpop.xlane.xlu1 %1041 }
 0x25c   :  { %v1100_v28 = vpop.xlane.xlu0 %1099  ;;  %v2074_v26 = vpop.eup %2073  ;;  %1665 = vst [vmem:[#allocation2 + $0x60] sm:$0xff] %v1601_v29  ;;  %v1569_v0 = vmul.f32 0.2, %v1505_v63  ;;  %v1404_v23 = vmul.f32 %v3080_v9, %v1333_v21  ;;  %v1148_v7 = vmul.f32 0.0078125, %v1042_v18 }
 0x25d   :  { %v1177_v51 = vmul.f32 0.0078125, %v1100_v28  ;;  %v2076_v48 = vpop.eup %2075  ;;  %v1604_v49 = vmax.f32 %v1476_v50, %v1540_v55  ;;  %v1508_v40 = vadd.f32 %v3086_v32, %v1437_v10  ;;  %v1336_v46 = vmul.f32 %v2074_v26, %v2916_v13 }
 0x25e   :  { %2085 = vrsqrt.f32 %v1242_v12  ;;  %v2078_v44 = vpop.eup %2077  ;;  %v1633_v16 = vmax.f32 %v1505_v63, %v1569_v0  ;;  %v1475_v15 = vadd.f32 %v3086_v32, %v1404_v23  ;;  %v1365_v37 = vmul.f32 %v2076_v48, %v2909_v62 }
 0x25f   :  { %v1209_v22 = vadd.f32 1e-05, %v1145_v17  ;;  %1668 = vst [vmem:[#allocation2 + $0x78] sm:$0xff] %v1604_v49  ;;  %v1572_v43 = vmul.f32 0.2, %v1508_v40  ;;  %v1407_v47 = vmul.f32 %v3080_v9, %v1336_v46  ;;  %v1368_v53 = vmul.f32 %v2078_v44, %v2926_v36  ;;  %v1106_v4 = vpop.xlane.xlu1 %1105 }
 0x260   :  { %v1212_v5 = vadd.f32 1e-05, %v1148_v7  ;;  %v1040_v25 = vpop.xlane.xlu0 %1039  ;;  %1697 = vst [vmem:[#allocation2 + $0x160] sm:$0xff] %v1633_v16  ;;  %v1539_v61 = vmul.f32 0.2, %v1475_v15  ;;  %v1436_v13 = vmul.f32 %v3080_v9, %v1365_v37  ;;  %v1180_v41 = vmul.f32 0.0078125, %v1106_v4 }
 0x261   :  { %2087 = vrsqrt.f32 %v1209_v22  ;;  %v1241_v35 = vadd.f32 1e-05, %v1177_v51  ;;  %v2080_v52 = vpop.eup %2079  ;;  %v1636_v34 = vmax.f32 %v1508_v40, %v1572_v43  ;;  %v1478_v62 = vadd.f32 %v3086_v32, %v1407_v47 }
 0x262   :  { %v1439_v57 = vmul.f32 %v3080_v9, %v1368_v53  ;;  %2089 = vrsqrt.f32 %v1212_v5  ;;  %v2082_v38 = vpop.eup %2081  ;;  %v1603_v20 = vmax.f32 %v1475_v15, %v1539_v61  ;;  %v1507_v36 = vadd.f32 %v3086_v32, %v1436_v13 }
 0x263   :  { %v1335_v54 = vmul.f32 %v2080_v52, %v2921_v2  ;;  %2091 = vrsqrt.f32 %v1241_v35  ;;  %1700 = vst [vmem:[#allocation2 + $0x178] sm:$0xff] %v1636_v34  ;;  %v1542_v58 = vmul.f32 0.2, %v1478_v62  ;;  %v1338_v60 = vmul.f32 %v2082_v38, %v2936_v59  ;;  %v1046_v50 = vpop.xlane.xlu1 %1045 }
 0x264   :  { %v1510_v8 = vadd.f32 %v3086_v32, %v1439_v57  ;;  %v1104_v39 = vpop.xlane.xlu0 %1103  ;;  %v2084_v31 = vpop.eup %2083  ;;  %1667 = vst [vmem:[#allocation2 + $0x70] sm:$0xff] %v1603_v20  ;;  %v1571_v29 = vmul.f32 0.2, %v1507_v36  ;;  %v1147_v21 = vmul.f32 0.0078125, %v1040_v25  ;;  %v1150_v55 = vmul.f32 0.0078125, %v1046_v50 }
 0x265   :  { %v1406_v63 = vmul.f32 %v3080_v9, %v1335_v54  ;;  %v1606_v10 = vmax.f32 %v1478_v62, %v1542_v58  ;;  %v1409_v2 = vmul.f32 %v3080_v9, %v1338_v60  ;;  %v1367_v17 = vmul.f32 %v2084_v31, %v2929_v1 }
 0x266   :  { %v1574_v12 = vmul.f32 0.2, %v1510_v8  ;;  %v1635_v18 = vmax.f32 %v1507_v36, %v1571_v29  ;;  %v1244_v59 = vadd.f32 1e-05, %v1180_v41  ;;  %v1211_v26 = vadd.f32 1e-05, %v1147_v21 }
 0x267   :  { %v1477_v28 = vadd.f32 %v3086_v32, %v1406_v63  ;;  %1670 = vst [vmem:[#allocation2 + $0x88] sm:$0xff] %v1606_v10  ;;  %v1480_v7 = vadd.f32 %v3086_v32, %v1409_v2  ;;  %v1438_v51 = vmul.f32 %v3080_v9, %v1367_v17  ;;  %v1214_v48 = vadd.f32 1e-05, %v1150_v55  ;;  %v1110_v49 = vpop.xlane.xlu1 %1109 }
 0x268   :  { %v2086_v0 = vpop.eup %2085  ;;  %v1638_v23 = vmax.f32 %v1510_v8, %v1574_v12  ;;  %v1044_v40 = vpop.xlane.xlu0 %1043  ;;  %1699 = vst [vmem:[#allocation2 + $0x170] sm:$0xff] %v1635_v18  ;;  %2093 = vrsqrt.f32 %v1244_v59  ;;  %v1179_v1 = vmul.f32 0.0078125, %v1104_v39  ;;  %v1182_v37 = vmul.f32 0.0078125, %v1110_v49 }
 0x269   :  { %v1541_v46 = vmul.f32 0.2, %v1477_v28  ;;  %v1370_v44 = vmul.f32 %v2086_v0, %v2946_v45  ;;  %v1544_v16 = vmul.f32 0.2, %v1480_v7  ;;  %v1509_v15 = vadd.f32 %v3086_v32, %v1438_v51 }
 0x26a   :  { %1702 = vst [vmem:[#allocation2 + $0x188] sm:$0xff] %v1638_v23  ;;  %2095 = vrsqrt.f32 %v1211_v26  ;;  %v1243_v53 = vadd.f32 1e-05, %v1179_v1  ;;  %v1246_v45 = vadd.f32 1e-05, %v1182_v37  ;;  %v1149_v57 = vmul.f32 0.0078125, %v1044_v40 }
 0x26b   :  { %v2088_v22 = vpop.eup %2087  ;;  %v1605_v43 = vmax.f32 %v1477_v28, %v1541_v46  ;;  %v1441_v47 = vmul.f32 %v3080_v9, %v1370_v44  ;;  %2097 = vrsqrt.f32 %v1214_v48  ;;  %v1608_v4 = vmax.f32 %v1480_v7, %v1544_v16  ;;  %v1050_v13 = vpop.xlane.xlu1 %1049 }
 0x26c   :  { %v2090_v5 = vpop.eup %2089  ;;  %v1573_v25 = vmul.f32 0.2, %v1509_v15  ;;  %v1337_v61 = vmul.f32 %v2088_v22, %v2941_v24  ;;  %v1108_v35 = vpop.xlane.xlu0 %1107  ;;  %2099 = vrsqrt.f32 %v1243_v53  ;;  %v1213_v58 = vadd.f32 1e-05, %v1149_v57 }
 0x26d   :  { %v2092_v52 = vpop.eup %2091  ;;  %1669 = vst [vmem:[#allocation2 + $0x80] sm:$0xff] %v1605_v43  ;;  %v1512_v34 = vadd.f32 %v3086_v32, %v1441_v47  ;;  %v1340_v62 = vmul.f32 %v2090_v5, %v2956_v3  ;;  %1672 = vst [vmem:[#allocation2 + $0x98] sm:$0xff] %v1608_v4  ;;  %2101 = vrsqrt.f32 %v1246_v45  ;;  %v1152_v8 = vmul.f32 0.0078125, %v1050_v13 }
 0x26e   :  { %v1637_v38 = vmax.f32 %v1509_v15, %v1573_v25  ;;  %v1408_v20 = vmul.f32 %v3080_v9, %v1337_v61  ;;  %v1369_v36 = vmul.f32 %v2092_v52, %v2949_v11  ;;  %v1181_v3 = vmul.f32 0.0078125, %v1108_v35 }
 0x26f   :  { %v1576_v54 = vmul.f32 0.2, %v1512_v34  ;;  %v1411_v24 = vmul.f32 %v3080_v9, %v1340_v62  ;;  %v1114_v50 = vpop.xlane.xlu1 %1113  ;;  %2103 = vrsqrt.f32 %v1213_v58  ;;  %v1216_v63 = vadd.f32 1e-05, %v1152_v8 }
 0x270   :  { %1701 = vst [vmem:[#allocation2 + $0x180] sm:$0xff] %v1637_v38  ;;  %v1479_v60 = vadd.f32 %v3086_v32, %v1408_v20  ;;  %v1440_v41 = vmul.f32 %v3080_v9, %v1369_v36  ;;  %v1048_v39 = vpop.xlane.xlu0 %1047  ;;  %v1245_v55 = vadd.f32 1e-05, %v1181_v3  ;;  %v1184_v10 = vmul.f32 0.0078125, %v1114_v50 }
 0x271   :  { %v1640_v31 = vmax.f32 %v1512_v34, %v1576_v54  ;;  %v1482_v29 = vadd.f32 %v3086_v32, %v1411_v24  ;;  %2105 = vrsqrt.f32 %v1216_v63  ;;  %v1151_v17 = vmul.f32 0.0078125, %v1048_v39  ;;  %v3229_v39 = vld [vmem:[%s3304_s3] ss:$0 sm:$0xff]  ;;  %s2165_s3 = smov [#allocation2]  }
 0x272   :  { %v1543_v11 = vmul.f32 0.2, %v1479_v60  ;;  %v1511_v21 = vadd.f32 %v3086_v32, %v1440_v41  ;;  %v2094_v12 = vpop.eup %2093  ;;  %2107 = vrsqrt.f32 %v1245_v55  ;;  %v1248_v49 = vadd.f32 1e-05, %v1184_v10 }
 0x273   :  { %1704 = vst [vmem:[#allocation2 + $0x198] sm:$0xff] %v1640_v31  ;;  %v1546_v2 = vmul.f32 0.2, %v1482_v29  ;;  %v1372_v26 = vmul.f32 %v2094_v12, %v2966_v33  ;;  %v1054_v0 = vpop.xlane.xlu1 %1053  ;;  %v1215_v40 = vadd.f32 1e-05, %v1151_v17 }
 0x274   :  { %v2096_v18 = vpop.eup %2095  ;;  %v1607_v28 = vmax.f32 %v1479_v60, %v1543_v11  ;;  %v1575_v59 = vmul.f32 0.2, %v1511_v21  ;;  %v1112_v23 = vpop.xlane.xlu0 %1111  ;;  %v1154_v16 = vmul.f32 0.0078125, %v1054_v0  ;;  %2109 = vrsqrt.f32 %v1248_v49  ;;  %v3398_v49 = vld [vmem:[#allocation7_spill] sm:$0xff] }
 0x275   :  { %v2098_v7 = vpop.eup %2097  ;;  %v1610_v51 = vmax.f32 %v1482_v29, %v1546_v2  ;;  %v1339_v48 = vmul.f32 %v2096_v18, %v2961_v6  ;;  %v1443_v44 = vmul.f32 %v3080_v9, %v1372_v26  ;;  %v1183_v37 = vmul.f32 0.0078125, %v1112_v23  ;;  %v3397_v23 = vld [vmem:[#allocation8_spill] sm:$0xff] }
 0x276   :  { %1671 = vst [vmem:[#allocation2 + $0x90] sm:$0xff] %v1607_v28  ;;  %v1639_v46 = vmax.f32 %v1511_v21, %v1575_v59  ;;  %v1342_v1 = vmul.f32 %v2098_v7, %v2976_v14  ;;  %v2100_v15 = vpop.eup %2099  ;;  %2111 = vrsqrt.f32 %v1215_v40  ;;  %v1218_v25 = vadd.f32 1e-05, %v1154_v16  ;;  %v3237_v21 = vld [vmem:[%s3305_s4] ss:$0 sm:$0xff]  ;;  %s1722_s4 = sshll.u32 %s2165_s3, 4  ;;  %s1723_s4 = int_to_ptr.vmem [resolvable:$true] %s1722_s4 }
 0x277   :  { %1674 = vst [vmem:[#allocation2 + $0xa8] sm:$0xff] %v1610_v51  ;;  %v1410_v33 = vmul.f32 %v3080_v9, %v1339_v48  ;;  %v2102_v22 = vpop.eup %2101  ;;  %v1514_v43 = vadd.f32 %v3086_v32, %v1443_v44  ;;  %v1371_v47 = vmul.f32 %v2100_v15, %v2969_v27  ;;  %v1118_v53 = vpop.xlane.xlu1 %1117  ;;  %v1247_v61 = vadd.f32 1e-05, %v1183_v37  ;;  %s2141_s1 = scalar_lea.vmem %s1723_s4, 8192  ;;  %p2146_p1 = scmp.lt.s32.totalorder %s1723_s4, %s1723_s4 }
 0x278   :  { %1703 = vst [vmem:[#allocation2 + $0x190] sm:$0xff] %v1639_v46  ;;  %v1413_v6 = vmul.f32 %v3080_v9, %v1342_v1  ;;  %v1052_v5 = vpop.xlane.xlu0 %1051  ;;  %v1374_v4 = vmul.f32 %v2102_v22, %v2986_v56  ;;  %v1186_v52 = vmul.f32 0.0078125, %v1118_v53  ;;  %2113 = vrsqrt.f32 %v1218_v25  ;;  %p2142_p0 = scmp.ne.s32.totalorder %s1723_s4, %s2141_s1  ;;  %p2147_p2 = scmp.lt.s32.totalorder %s2141_s1, %s2141_s1 }
 0x279   :  { %v1481_v14 = vadd.f32 %v3086_v32, %v1410_v33  ;;  %v1578_v45 = vmul.f32 0.2, %v1514_v43  ;;  %v1442_v35 = vmul.f32 %v3080_v9, %v1371_v47  ;;  %v2104_v34 = vpop.eup %2103  ;;  %v1153_v27 = vmul.f32 0.0078125, %v1052_v5 }
 0x27a   :  { %v1484_v13 = vadd.f32 %v3086_v32, %v1413_v6  ;;  %v1445_v57 = vmul.f32 %v3080_v9, %v1374_v4  ;;  %v1341_v56 = vmul.f32 %v2104_v34, %v2981_v19  ;;  %2115 = vrsqrt.f32 %v1247_v61  ;;  %p2148_p3 = por %p2147_p2, %p2146_p1 }
 0x27b   :  { %v1545_v62 = vmul.f32 0.2, %v1481_v14  ;;  %v1642_v38 = vmax.f32 %v1514_v43, %v1578_v45  ;;  %v1513_v36 = vadd.f32 %v3086_v32, %v1442_v35  ;;  %v1058_v54 = vpop.xlane.xlu1 %1057  ;;  %v2106_v58 = vpop.eup %2105  ;;  %v1250_v41 = vadd.f32 1e-05, %v1186_v52 }
 0x27c   :  { %v1548_v20 = vmul.f32 0.2, %v1484_v13  ;;  %v1116_v24 = vpop.xlane.xlu0 %1115  ;;  %v1516_v60 = vadd.f32 %v3086_v32, %v1445_v57  ;;  %v2108_v3 = vpop.eup %2107  ;;  %v1412_v31 = vmul.f32 %v3229_v39, %v1341_v56  ;;  %v1344_v19 = vmul.f32 %v2106_v58, %v2996_v30  ;;  %p2149_p4 = pnand %p2148_p3, %p2142_p0 }
 0x27d   :  { %v1609_v8 = vmax.f32 %v1481_v14, %v1545_v62  ;;  %1706 = vst [vmem:[#allocation2 + $0x1a8] sm:$0xff] %v1642_v38  ;;  %v1577_v9 = vmul.f32 0.2, %v1513_v36  ;;  %v1373_v63 = vmul.f32 %v2108_v3, %v2989_v42  ;;  %2117 = vrsqrt.f32 %v1250_v41  ;;  %v3399_v14 = vld [vmem:[#allocation10_spill] sm:$0xff]  ;;  %v3400_v62 = vld [vmem:[#allocation9_spill] sm:$0xff]  ;;  %v3401_v3 = vld [vmem:[#allocation24_spill] sm:$0xff] }
 0x27e   :  { %v1612_v50 = vmax.f32 %v1484_v13, %v1548_v20  ;;  %v1580_v29 = vmul.f32 0.2, %v1516_v60  ;;  %v1217_v32 = vadd.f32 1e-05, %v1153_v27  ;;  %v1483_v55 = vadd.f32 %v3237_v21, %v1412_v31  ;;  %v2110_v17 = vpop.eup %2109 }
 0x27f   :  { %1673 = vst [vmem:[#allocation2 + $0xa0] sm:$0xff] %v1609_v8  ;;  %v1641_v11 = vmax.f32 %v1513_v36, %v1577_v9  ;;  %v1415_v10 = vmul.f32 %v3229_v39, %v1344_v19  ;;  %v1156_v12 = vmul.f32 0.0078125, %v1058_v54  ;;  %v1122_v2 = vpop.xlane.xlu1 %1121  ;;  %v1444_v42 = vmul.f32 %v3229_v39, %v1373_v63 }
 0x280   :  { %1676 = vst [vmem:[#allocation2 + $0xb8] sm:$0xff] %v1612_v50  ;;  %v1056_v30 = vpop.xlane.xlu0 %1055  ;;  %v1644_v18 = vmax.f32 %v1516_v60, %v1580_v29  ;;  %2119 = vrsqrt.f32 %v1217_v32  ;;  %v1185_v28 = vmul.f32 0.0078125, %v1116_v24  ;;  %v2112_v59 = vpop.eup %2111  ;;  %v1547_v26 = vmul.f32 0.2, %v1483_v55 }
 0x281   :  { %1705 = vst [vmem:[#allocation2 + $0x1a0] sm:$0xff] %v1641_v11  ;;  %v1486_v0 = vadd.f32 %v3237_v21, %v1415_v10  ;;  %v1376_v7 = vmul.f32 %v2110_v17, %v3397_v23  ;;  %v1220_v51 = vadd.f32 1e-05, %v1156_v12  ;;  %v1515_v48 = vadd.f32 %v3237_v21, %v1444_v42  ;;  %v3402_v11 = vld [vmem:[#allocation23_spill] sm:$0xff] }
 0x282   :  { %1708 = vst [vmem:[#allocation2 + $0x1b8] sm:$0xff] %v1644_v18  ;;  %v1343_v40 = vmul.f32 %v2112_v59, %v3398_v49  ;;  %v1249_v46 = vadd.f32 1e-05, %v1185_v28  ;;  %v1188_v44 = vmul.f32 0.0078125, %v1122_v2  ;;  %v1611_v1 = vmax.f32 %v1483_v55, %v1547_v26  ;;  %v2114_v22 = vpop.eup %2113 }
 0x283   :  { %v1550_v16 = vmul.f32 0.2, %v1486_v0  ;;  %v1447_v15 = vmul.f32 %v3229_v39, %v1376_v7  ;;  %2121 = vrsqrt.f32 %v1220_v51  ;;  %v1062_v33 = vpop.xlane.xlu1 %1061  ;;  %v1579_v43 = vmul.f32 0.2, %v1515_v48 }
 0x284   :  { %v1120_v37 = vpop.xlane.xlu0 %1119  ;;  %v1414_v6 = vmul.f32 %v3229_v39, %v1343_v40  ;;  %2123 = vrsqrt.f32 %v1249_v46  ;;  %v1252_v47 = vadd.f32 1e-05, %v1188_v44  ;;  %1675 = vst [vmem:[#allocation2 + $0xb0] sm:$0xff] %v1611_v1  ;;  %v1346_v4 = vmul.f32 %v2114_v22, %v3399_v14  ;;  %v2116_v61 = vpop.eup %2115  ;;  %v3404_v46 = vld [vmem:[#allocation25_spill] sm:$0xff]  ;;  %v3405_v22 = vld [vmem:[#allocation12_spill] sm:$0xff] }
 0x285   :  { %v1614_v53 = vmax.f32 %v1486_v0, %v1550_v16  ;;  %v1518_v5 = vadd.f32 %v3237_v21, %v1447_v15  ;;  %v1155_v25 = vmul.f32 0.0078125, %v1056_v30  ;;  %v1643_v45 = vmax.f32 %v1515_v48, %v1579_v43  ;;  %v3403_v0 = vld [vmem:[#allocation11_spill] sm:$0xff] }
 0x286   :  { %v1485_v13 = vadd.f32 %v3237_v21, %v1414_v6  ;;  %2125 = vrsqrt.f32 %v1252_v47  ;;  %v1158_v35 = vmul.f32 0.0078125, %v1062_v33  ;;  %v1417_v34 = vmul.f32 %v3229_v39, %v1346_v4 }
 0x287   :  { %1678 = vst [vmem:[#allocation2 + $0xc8] sm:$0xff] %v1614_v53  ;;  %v1582_v52 = vmul.f32 0.2, %v1518_v5  ;;  %v1375_v57 = vmul.f32 %v2116_v61, %v3400_v62  ;;  %v1219_v27 = vadd.f32 1e-05, %v1155_v25  ;;  %v1126_v38 = vpop.xlane.xlu1 %1125  ;;  %v2118_v36 = vpop.eup %2117  ;;  %1707 = vst [vmem:[#allocation2 + $0x1b0] sm:$0xff] %v1643_v45 }
 0x288   :  { %v1060_v20 = vpop.xlane.xlu0 %1059  ;;  %v1549_v56 = vmul.f32 0.2, %v1485_v13  ;;  %v1222_v54 = vadd.f32 1e-05, %v1158_v35  ;;  %v1187_v24 = vmul.f32 0.0078125, %v1120_v37  ;;  %v1190_v58 = vmul.f32 0.0078125, %v1126_v38 }
 0x289   :  { %v1646_v8 = vmax.f32 %v1518_v5, %v1582_v52  ;;  %v1488_v60 = vadd.f32 %v3237_v21, %v1417_v34  ;;  %v1446_v41 = vmul.f32 %v3229_v39, %v1375_v57  ;;  %v1378_v50 = vmul.f32 %v2118_v36, %v3401_v3  ;;  %v3406_v45 = vld [vmem:[#allocation13_spill] sm:$0xff] }
 0x28a   :  { %v2120_v9 = vpop.eup %2119  ;;  %v1613_v31 = vmax.f32 %v1485_v13, %v1549_v56  ;;  %2127 = vrsqrt.f32 %v1219_v27  ;;  %v1251_v19 = vadd.f32 1e-05, %v1187_v24  ;;  %v1254_v12 = vadd.f32 1e-05, %v1190_v58  ;;  %v3407_v27 = vld [vmem:[#allocation14_spill] sm:$0xff] }
 0x28b   :  { %1710 = vst [vmem:[#allocation2 + $0x1c8] sm:$0xff] %v1646_v8  ;;  %v1552_v29 = vmul.f32 0.2, %v1488_v60  ;;  %v1517_v63 = vadd.f32 %v3237_v21, %v1446_v41  ;;  %v1449_v32 = vmul.f32 %v3229_v39, %v1378_v50  ;;  %v1345_v55 = vmul.f32 %v2120_v9, %v3402_v11  ;;  %v3408_v24 = vld [vmem:[#allocation26_spill] sm:$0xff]  ;;  %v3409_v50 = vld [vmem:[#allocation15_spill] sm:$0xff] }
 0x28c   :  { %v1124_v10 = vpop.xlane.xlu0 %1123  ;;  %1677 = vst [vmem:[#allocation2 + $0xc0] sm:$0xff] %v1613_v31  ;;  %2129 = vrsqrt.f32 %v1222_v54  ;;  %v1157_v2 = vmul.f32 0.0078125, %v1060_v20 }
 0x28d   :  { %v1189_v30 = vmul.f32 0.0078125, %v1124_v10  ;;  %v2122_v17 = vpop.eup %2121  ;;  %v1616_v18 = vmax.f32 %v1488_v60, %v1552_v29  ;;  %v1581_v42 = vmul.f32 0.2, %v1517_v63  ;;  %v1520_v28 = vadd.f32 %v3237_v21, %v1449_v32 }
 0x28e   :  { %v1416_v59 = vmul.f32 %v3229_v39, %v1345_v55  ;;  %v2124_v26 = vpop.eup %2123  ;;  %v1348_v23 = vmul.f32 %v2122_v17, %v3403_v0  ;;  %2131 = vrsqrt.f32 %v1251_v19  ;;  %v1221_v7 = vadd.f32 1e-05, %v1157_v2  ;;  %v3410_v55 = vld [vmem:[#allocation16_spill] sm:$0xff] }
 0x28f   :  { %v1253_v51 = vadd.f32 1e-05, %v1189_v30  ;;  %1680 = vst [vmem:[#allocation2 + $0xd8] sm:$0xff] %v1616_v18  ;;  %v1645_v48 = vmax.f32 %v1517_v63, %v1581_v42  ;;  %v1584_v49 = vmul.f32 0.2, %v1520_v28  ;;  %v1377_v44 = vmul.f32 %v2124_v26, %v3404_v46 }
 0x290   :  { %v1487_v40 = vadd.f32 %v3237_v21, %v1416_v59  ;;  %v2126_v1 = vpop.eup %2125  ;;  %v1419_v16 = vmul.f32 %v3229_v39, %v1348_v23  ;;  %2133 = vrsqrt.f32 %v1254_v12  ;;  %v3411_v12 = vld [vmem:[#allocation17_spill] sm:$0xff] }
 0x291   :  { %1709 = vst [vmem:[#allocation2 + $0x1c0] sm:$0xff] %v1645_v48  ;;  %v1648_v15 = vmax.f32 %v1520_v28, %v1584_v49  ;;  %v1448_v37 = vmul.f32 %v3229_v39, %v1377_v44  ;;  %v1380_v43 = vmul.f32 %v2126_v1, %v3405_v22  ;;  %2135 = vrsqrt.f32 %v1221_v7 }
 0x292   :  { %v1551_v33 = vmul.f32 0.2, %v1487_v40  ;;  %v1490_v6 = vadd.f32 %v3237_v21, %v1419_v16  ;;  %2137 = vrsqrt.f32 %v1253_v51 }
 0x293   :  { %1712 = vst [vmem:[#allocation2 + $0x1d8] sm:$0xff] %v1648_v15  ;;  %v1519_v53 = vadd.f32 %v3237_v21, %v1448_v37  ;;  %v1451_v5 = vmul.f32 %v3229_v39, %v1380_v43 }
 0x294   :  { %v1615_v47 = vmax.f32 %v1487_v40, %v1551_v33  ;;  %v2128_v14 = vpop.eup %2127  ;;  %v1554_v4 = vmul.f32 0.2, %v1490_v6 }
 0x295   :  { %v1583_v25 = vmul.f32 0.2, %v1519_v53  ;;  %v1522_v61 = vadd.f32 %v3237_v21, %v1451_v5  ;;  %v1347_v13 = vmul.f32 %v2128_v14, %v3406_v45 }
 0x296   :  { %1679 = vst [vmem:[#allocation2 + $0xd0] sm:$0xff] %v1615_v47  ;;  %v2130_v35 = vpop.eup %2129  ;;  %v1618_v52 = vmax.f32 %v1490_v6, %v1554_v4 }
 0x297   :  { %v1647_v34 = vmax.f32 %v1519_v53, %v1583_v25  ;;  %v1586_v62 = vmul.f32 0.2, %v1522_v61  ;;  %v1418_v57 = vmul.f32 %v3229_v39, %v1347_v13  ;;  %v1350_v38 = vmul.f32 %v2130_v35, %v3407_v27 }
 0x298   :  { %v2132_v20 = vpop.eup %2131  ;;  %1682 = vst [vmem:[#allocation2 + $0xe8] sm:$0xff] %v1618_v52 }
 0x299   :  { %1711 = vst [vmem:[#allocation2 + $0x1d0] sm:$0xff] %v1647_v34  ;;  %v1650_v36 = vmax.f32 %v1522_v61, %v1586_v62  ;;  %v1489_v56 = vadd.f32 %v3237_v21, %v1418_v57  ;;  %v1421_v54 = vmul.f32 %v3229_v39, %v1350_v38  ;;  %v1379_v58 = vmul.f32 %v2132_v20, %v3408_v24 }
 0x29a   :  { %v2134_v8 = vpop.eup %2133 }
 0x29b   :  { %1714 = vst [vmem:[#allocation2 + $0x1e8] sm:$0xff] %v1650_v36  ;;  %v1553_v60 = vmul.f32 0.2, %v1489_v56  ;;  %v1492_v41 = vadd.f32 %v3237_v21, %v1421_v54  ;;  %v1450_v3 = vmul.f32 %v3229_v39, %v1379_v58  ;;  %v1382_v9 = vmul.f32 %v2134_v8, %v3409_v50  ;;  %v2136_v31 = vpop.eup %2135 }
 0x29c   :  { %v2138_v19 = vpop.eup %2137  ;;  %v1349_v10 = vmul.f32 %v2136_v31, %v3410_v55 }
 0x29d   :  { %v1617_v29 = vmax.f32 %v1489_v56, %v1553_v60  ;;  %v1556_v63 = vmul.f32 0.2, %v1492_v41  ;;  %v1521_v32 = vadd.f32 %v3237_v21, %v1450_v3  ;;  %v1453_v11 = vmul.f32 %v3229_v39, %v1382_v9 }
 0x29e   :  { %v1381_v2 = vmul.f32 %v2138_v19, %v3411_v12  ;;  %v1420_v42 = vmul.f32 %v3229_v39, %v1349_v10 }
 0x29f   :  { %1681 = vst [vmem:[#allocation2 + $0xe0] sm:$0xff] %v1617_v29  ;;  %v1620_v30 = vmax.f32 %v1492_v41, %v1556_v63  ;;  %v1585_v17 = vmul.f32 0.2, %v1521_v32  ;;  %v1524_v18 = vadd.f32 %v3237_v21, %v1453_v11 }
 0x2a0   :  { %v1452_v28 = vmul.f32 %v3229_v39, %v1381_v2  ;;  %v1491_v0 = vadd.f32 %v3237_v21, %v1420_v42 }
 0x2a1   :  { %1684 = vst [vmem:[#allocation2 + $0xf8] sm:$0xff] %v1620_v30  ;;  %v1649_v59 = vmax.f32 %v1521_v32, %v1585_v17  ;;  %v1588_v26 = vmul.f32 0.2, %v1524_v18 }
 0x2a2   :  { %v1523_v23 = vadd.f32 %v3237_v21, %v1452_v28  ;;  %v1555_v51 = vmul.f32 0.2, %v1491_v0 }
 0x2a3   :  { %1713 = vst [vmem:[#allocation2 + $0x1e0] sm:$0xff] %v1649_v59  ;;  %v1652_v7 = vmax.f32 %v1524_v18, %v1588_v26 }
 0x2a4   :  { %v1587_v48 = vmul.f32 0.2, %v1523_v23  ;;  %v1619_v49 = vmax.f32 %v1491_v0, %v1555_v51 }
 0x2a5   :  { %1716 = vst [vmem:[#allocation2 + $0x1f8] sm:$0xff] %v1652_v7 }
 0x2a6   :  { %v1651_v40 = vmax.f32 %v1523_v23, %v1587_v48  ;;  %1683 = vst [vmem:[#allocation2 + $0xf0] sm:$0xff] %v1619_v49 }
 0x2a8   :  { %1715 = vst [vmem:[#allocation2 + $0x1f0] sm:$0xff] %v1651_v40 }
 0x2a9   :  { %2152 = shalt.err (!%p2149_p4)
}
 0x2aa   :  { %s2153_s17 = scalar_lea.hbm %s3306_s5, 8192 }
 0x2ab   :  { %p2154_p5 = scmp.ne.s32.totalorder %s3306_s5, %s2153_s17  ;;  %p2157_p6 = scmp.lt.u32.totalorder %s2153_s17, %s3306_s5 }
 0x2ad   :  { %p2159_p7 = pnand %p2157_p6, %p2154_p5 }
 0x2af   :  { %2162 = shalt.err (!%p2159_p7)
}
 0x2b0   :  { %s2166_s22 = smov 128   ;;  %s2167_s23 = smov 8  }
 0x2b1   :  { %1728 = dma.vmem_to_hbm [thread:$0]  %s1723_s4, 8192, %s3306_s5, [#allocation3], %s2166_s22, %s2166_s22, %s2167_s23  }
 0x2b2   :  { %2163 = dma.done.wait [#allocation3], 8192  }
 0x2b3   :  { %2164 = vsyncadd [#allocation3], 4294959104 }
 0x2b4   :  { %1732 = vsyncpa [#allocation3], 1 }

</bundles_post_ra>
